<compile_context>
chip_gen: v6e
topology: v6e:2x2x1
jax: 0.10.0
libtpu: 0.0.40
codegen_flags: <defaults>
</compile_context>

<pallas_src>
import functools
import math

import jax
import jax.numpy as jnp
from jax.experimental import pallas as pl
from jax.experimental.pallas import tpu as pltpu


def _round_up(n, m):
    return ((n + m - 1) // m) * m


def _mlp_kernel(return_embeddings, x_ref, w1_ref, b1_ref, mask_ref, w2_ref,
                b2_ref, *out_refs):
    if return_embeddings:
        out_ref, h1_ref, hdrop_ref, hrelu_ref, logits_ref = out_refs
    else:
        (out_ref,) = out_refs

    # ---- layer1: (TB, 784)bf16 @ (784, 768)bf16 -> f32 accumulate, + bias ----
    h1 = jnp.dot(x_ref[...], w1_ref[...],
                 preferred_element_type=jnp.float32) + b1_ref[...]

    # ---- dropout BEFORE relu (training mode): mask holds 0 or 1/(1-p) ----
    hdrop = h1 * mask_ref[...]

    # ---- relu ----
    hrelu = jnp.maximum(hdrop, 0.0)

    # ---- layer2: output lanes padded to 128 so stores are lane-dense ----
    logits = jnp.dot(hrelu.astype(jnp.bfloat16), w2_ref[...],
                     preferred_element_type=jnp.float32) + b2_ref[...]

    # ---- softmax over the padded last dim (padded lanes carry bias -1e30 -> ~0) ----
    m = jnp.max(logits, axis=-1, keepdims=True)
    e = jnp.exp(logits - m)
    denom = jnp.sum(e, axis=-1, keepdims=True)
    out_ref[...] = e / denom

    if return_embeddings:
        h1_ref[...] = h1
        hdrop_ref[...] = hdrop
        hrelu_ref[...] = hrelu
        logits_ref[...] = logits


def mlp_dropout_before_relu(x, w1, b1, w2, b2, *, p, dropout_key=None,
                            return_embeddings=True, block_b=256):
    """Forward pass. Returns (softmax_out, extract_embedding) like the PyTorch module.

    w1: (784, 768), b1: (768,), w2: (768, 10), b2: (10,)  (i.e. nn.Linear weights
    pre-transposed so the kernel computes y = x @ W + b directly on the MXU).
    """
    IN = 28 * 28
    H1 = w1.shape[1]
    H2 = w2.shape[1]
    B = x.size // IN

    x_flat = x.reshape(B, IN).astype(jnp.float32)

    # ---- batch tiling: TB rows per grid step, padded to a multiple of TB ----
    TB = min(block_b, _round_up(B, 8))
    B_pad = _round_up(B, TB)
    NPAD = _round_up(max(H2, 128), 128)          # lane-dense output width

    x_pad = jnp.pad(x_flat, ((0, B_pad - B), (0, 0))).astype(jnp.bfloat16)
    w1_bf = w1.astype(jnp.bfloat16)
    b1_2d = b1.reshape(1, H1).astype(jnp.float32)

    w2_pad = jnp.zeros((H1, NPAD), jnp.bfloat16).at[:, :H2].set(
        w2.astype(jnp.bfloat16))
    # Padded logit lanes get a huge negative bias so softmax sends them to ~0.
    b2_pad = jnp.full((1, NPAD), -1e30, dtype=jnp.float32).at[:, :H2].set(
        b2.astype(jnp.float32))

    # ---- dropout keep-mask (training-mode semantics), generated outside the kernel ----
    if p > 0.0:
        if dropout_key is None:
            dropout_key = jax.random.PRNGKey(0)
        keep = jax.random.bernoulli(dropout_key, 1.0 - p, (B_pad, H1))
        mask = keep.astype(jnp.float32) * jnp.float32(1.0 / (1.0 - p))
    else:
        mask = jnp.ones((B_pad, H1), jnp.float32)

    grid = (B_pad // TB,)

    in_specs = [
        pl.BlockSpec((TB, IN), lambda i: (i, 0)),     # x block
        pl.BlockSpec((IN, H1), lambda i: (0, 0)),     # W1 (VMEM-resident)
        pl.BlockSpec((1, H1), lambda i: (0, 0)),      # b1
        pl.BlockSpec((TB, H1), lambda i: (i, 0)),     # dropout mask block
        pl.BlockSpec((H1, NPAD), lambda i: (0, 0)),   # W2 padded (VMEM-resident)
        pl.BlockSpec((1, NPAD), lambda i: (0, 0)),    # b2 padded
    ]

    out_shapes = [jax.ShapeDtypeStruct((B_pad, NPAD), jnp.float32)]   # softmax out
    out_specs = [pl.BlockSpec((TB, NPAD), lambda i: (i, 0))]
    if return_embeddings:
        out_shapes += [
            jax.ShapeDtypeStruct((B_pad, H1), jnp.float32),   # layer1 pre-dropout
            jax.ShapeDtypeStruct((B_pad, H1), jnp.float32),   # after dropout
            jax.ShapeDtypeStruct((B_pad, H1), jnp.float32),   # after relu
            jax.ShapeDtypeStruct((B_pad, NPAD), jnp.float32),  # layer2 logits (padded)
        ]
        out_specs += [
            pl.BlockSpec((TB, H1), lambda i: (i, 0)),
            pl.BlockSpec((TB, H1), lambda i: (i, 0)),
            pl.BlockSpec((TB, H1), lambda i: (i, 0)),
            pl.BlockSpec((TB, NPAD), lambda i: (i, 0)),
        ]

    inputs = (x_pad, w1_bf, b1_2d, mask, w2_pad, b2_pad)

    in_bytes = sum(int(a.size) * a.dtype.itemsize for a in inputs)
    out_bytes = sum(math.prod(s.shape) * jnp.dtype(s.dtype).itemsize
                    for s in out_shapes)
    cost = pl.CostEstimate(
        flops=2 * B_pad * IN * H1 + 2 * B_pad * H1 * NPAD,
        transcendentals=B_pad * NPAD,
        bytes_accessed=in_bytes + out_bytes,
    )

    results = pl.pallas_call(
        functools.partial(_mlp_kernel, return_embeddings),
        out_shape=tuple(out_shapes),
        grid=grid,
        in_specs=in_specs,
        out_specs=out_specs,
        compiler_params=pltpu.CompilerParams(
            dimension_semantics=("parallel",),   # megacore sharding on v7x
        ),
        cost_estimate=cost,
    )(*inputs)

    if return_embeddings:
        out_p, h1_p, hdrop_p, hrelu_p, logits_p = results
        out = out_p[:B, :H2]
        extract_embedding = [x_flat, h1_p[:B], hdrop_p[:B], hrelu_p[:B],
                             logits_p[:B, :H2]]
        return out, extract_embedding
    else:
        (out_p,) = results
        return out_p[:B, :H2], None


if __name__ == "__main__":
    key = jax.random.PRNGKey(0)
    k_x, k_w1, k_b1, k_w2, k_b2, k_drop = jax.random.split(key, 6)

    B = 8                       # batch
    IN, H1, H2 = 28 * 28, 768, 10
    P = 0.25                    # dropout probability

    # deterministic synthetic parameters (PyTorch-like uniform fan-in init)
    x = jax.random.normal(k_x, (B, 1, 28, 28), dtype=jnp.float32)
    lim1 = 1.0 / (IN ** 0.5)
    lim2 = 1.0 / (H1 ** 0.5)
    w1 = jax.random.uniform(k_w1, (IN, H1), minval=-lim1, maxval=lim1, dtype=jnp.float32)
    b1 = jax.random.uniform(k_b1, (H1,), minval=-lim1, maxval=lim1, dtype=jnp.float32)
    w2 = jax.random.uniform(k_w2, (H1, H2), minval=-lim2, maxval=lim2, dtype=jnp.float32)
    b2 = jax.random.uniform(k_b2, (H2,), minval=-lim2, maxval=lim2, dtype=jnp.float32)

    # full module semantics (returns the 5 extracted embeddings)
    out, emb = mlp_dropout_before_relu(
        x, w1, b1, w2, b2, p=P, dropout_key=k_drop, return_embeddings=True)
    out = jax.block_until_ready(out)
    emb = [jax.block_until_ready(e) for e in emb]

    # fast path: no debug-activation writeback
    out_fast, _ = mlp_dropout_before_relu(
        x, w1, b1, w2, b2, p=P, dropout_key=k_drop, return_embeddings=False)
    out_fast = jax.block_until_ready(out_fast)

    # ---- pure-JAX reference (same bf16 matmul precision, same dropout mask) ----
    x_flat = x.reshape(B, IN)
    keep = jax.random.bernoulli(k_drop, 1.0 - P, (B, H1))   # B_pad == B here
    mask = keep.astype(jnp.float32) / (1.0 - P)
    h1_r = jnp.dot(x_flat.astype(jnp.bfloat16), w1.astype(jnp.bfloat16),
                   preferred_element_type=jnp.float32) + b1
    hdrop_r = h1_r * mask
    hrelu_r = jnp.maximum(hdrop_r, 0.0)
    logits_r = jnp.dot(hrelu_r.astype(jnp.bfloat16), w2.astype(jnp.bfloat16),
                       preferred_element_type=jnp.float32) + b2
    out_r = jax.nn.softmax(logits_r, axis=-1)

    assert out.shape == (B, H2)
    assert len(emb) == 5
    assert jnp.allclose(jnp.sum(out, axis=-1), 1.0, atol=1e-4)
    assert jnp.allclose(out_fast, out, atol=1e-5, rtol=1e-5)
    assert jnp.allclose(out, out_r, atol=2e-2, rtol=2e-2)
    assert jnp.allclose(emb[1], h1_r, atol=5e-2, rtol=5e-2)
    assert jnp.allclose(emb[2], hdrop_r, atol=5e-2, rtol=5e-2)
    assert jnp.allclose(emb[3], hrelu_r, atol=5e-2, rtol=5e-2)
    assert jnp.allclose(emb[4], logits_r, atol=5e-2, rtol=5e-2)

    print("KERNEL_OK")
</pallas_src>

<mosaic_0001>
module attributes {stable_mosaic.version = 11 : i64} {
  func.func @_mlp_kernel(%arg0: i32, %arg1: memref<8x784xbf16, #tpu.memory_space<vmem>>, %arg2: memref<784x768xbf16, #tpu.memory_space<vmem>>, %arg3: memref<1x768xf32, #tpu.memory_space<vmem>>, %arg4: memref<8x768xf32, #tpu.memory_space<vmem>>, %arg5: memref<768x128xbf16, #tpu.memory_space<vmem>>, %arg6: memref<1x128xf32, #tpu.memory_space<vmem>>, %arg7: memref<8x128xf32, #tpu.memory_space<vmem>>, %arg8: memref<8x768xf32, #tpu.memory_space<vmem>>, %arg9: memref<8x768xf32, #tpu.memory_space<vmem>>, %arg10: memref<8x768xf32, #tpu.memory_space<vmem>>, %arg11: memref<8x128xf32, #tpu.memory_space<vmem>>) attributes {dimension_semantics = [#tpu.dimension_semantics<parallel>], iteration_bounds = array<i64: 1>, scalar_prefetch = 0 : i64, scratch_operands = 0 : i64, tpu.core_type = #tpu.core_type<tc>, window_params = [{transform_indices = @transform_0, window_bounds = array<i64: 8, 784>}, {pipeline_mode = #tpu.pipeline_mode<synchronous>, transform_indices = @transform_1, window_bounds = array<i64: 784, 768>}, {pipeline_mode = #tpu.pipeline_mode<synchronous>, transform_indices = @transform_2, window_bounds = array<i64: 1, 768>}, {transform_indices = @transform_3, window_bounds = array<i64: 8, 768>}, {pipeline_mode = #tpu.pipeline_mode<synchronous>, transform_indices = @transform_4, window_bounds = array<i64: 768, 128>}, {pipeline_mode = #tpu.pipeline_mode<synchronous>, transform_indices = @transform_5, window_bounds = array<i64: 1, 128>}, {transform_indices = @transform_6, window_bounds = array<i64: 8, 128>}, {transform_indices = @transform_7, window_bounds = array<i64: 8, 768>}, {transform_indices = @transform_8, window_bounds = array<i64: 8, 768>}, {transform_indices = @transform_9, window_bounds = array<i64: 8, 768>}, {transform_indices = @transform_10, window_bounds = array<i64: 8, 128>}]} {
    %c0 = arith.constant 0 : index
    %c0_0 = arith.constant 0 : index
    %0 = vector.load %arg1[%c0, %c0_0] : memref<8x784xbf16, #tpu.memory_space<vmem>>, vector<8x784xbf16>
    %c0_1 = arith.constant 0 : index
    %c0_2 = arith.constant 0 : index
    %1 = vector.load %arg2[%c0_1, %c0_2] : memref<784x768xbf16, #tpu.memory_space<vmem>>, vector<784x768xbf16>
    %cst = arith.constant dense<0.000000e+00> : vector<8x768xf32>
    %2 = tpu.matmul %0, %1, %cst {dimension_numbers = #tpu.dot_dimension_numbers<[1], [0], [0], [1], [0, 0, 1, 1], [], []>} : vector<8x784xbf16>, vector<784x768xbf16>, vector<8x768xf32> -> vector<8x768xf32>
    %c0_3 = arith.constant 0 : index
    %c0_4 = arith.constant 0 : index
    %3 = vector.load %arg3[%c0_3, %c0_4] : memref<1x768xf32, #tpu.memory_space<vmem>>, vector<1x768xf32>
    %4 = vector.broadcast %3 : vector<1x768xf32> to vector<8x768xf32>
    %5 = arith.addf %2, %4 : vector<8x768xf32>
    %c0_5 = arith.constant 0 : index
    %c0_6 = arith.constant 0 : index
    %6 = vector.load %arg4[%c0_5, %c0_6] : memref<8x768xf32, #tpu.memory_space<vmem>>, vector<8x768xf32>
    %7 = arith.mulf %5, %6 : vector<8x768xf32>
    %cst_7 = arith.constant 0.000000e+00 : f32
    %8 = vector.broadcast %cst_7 : f32 to vector<8x768xf32>
    %9 = arith.maximumf %7, %8 : vector<8x768xf32>
    %10 = arith.truncf %9 : vector<8x768xf32> to vector<8x768xbf16>
    %c0_8 = arith.constant 0 : index
    %c0_9 = arith.constant 0 : index
    %11 = vector.load %arg5[%c0_8, %c0_9] : memref<768x128xbf16, #tpu.memory_space<vmem>>, vector<768x128xbf16>
    %cst_10 = arith.constant dense<0.000000e+00> : vector<8x128xf32>
    %12 = tpu.matmul %10, %11, %cst_10 {dimension_numbers = #tpu.dot_dimension_numbers<[1], [0], [0], [1], [0, 0, 1, 1], [], []>} : vector<8x768xbf16>, vector<768x128xbf16>, vector<8x128xf32> -> vector<8x128xf32>
    %c0_11 = arith.constant 0 : index
    %c0_12 = arith.constant 0 : index
    %13 = vector.load %arg6[%c0_11, %c0_12] : memref<1x128xf32, #tpu.memory_space<vmem>>, vector<1x128xf32>
    %14 = vector.broadcast %13 : vector<1x128xf32> to vector<8x128xf32>
    %15 = arith.addf %12, %14 : vector<8x128xf32>
    %cst_13 = arith.constant dense<0xFF800000> : vector<8xf32>
    %16 = vector.multi_reduction <maximumf>, %15, %cst_13 [1] : vector<8x128xf32> to vector<8xf32>
    %17 = vector.shape_cast %16 : vector<8xf32> to vector<8x1xf32>
    %18 = vector.broadcast %17 : vector<8x1xf32> to vector<8x128xf32>
    %19 = arith.subf %15, %18 : vector<8x128xf32>
    %20 = math.exp %19 : vector<8x128xf32>
    %cst_14 = arith.constant dense<0.000000e+00> : vector<8xf32>
    %21 = vector.multi_reduction <add>, %20, %cst_14 [1] : vector<8x128xf32> to vector<8xf32>
    %22 = vector.shape_cast %21 : vector<8xf32> to vector<8x1xf32>
    %23 = vector.broadcast %22 : vector<8x1xf32> to vector<8x128xf32>
    %24 = arith.divf %20, %23 : vector<8x128xf32>
    %c0_15 = arith.constant 0 : index
    %c0_16 = arith.constant 0 : index
    %25 = vector.load %arg7[%c0_15, %c0_16] : memref<8x128xf32, #tpu.memory_space<vmem>>, vector<8x128xf32>
    tpu.vector_store %arg7[%c0_15, %c0_16], %24 {strides = array<i32>} : memref<8x128xf32, #tpu.memory_space<vmem>>, vector<8x128xf32>,
    %c0_17 = arith.constant 0 : index
    %c0_18 = arith.constant 0 : index
    %26 = vector.load %arg8[%c0_17, %c0_18] : memref<8x768xf32, #tpu.memory_space<vmem>>, vector<8x768xf32>
    tpu.vector_store %arg8[%c0_17, %c0_18], %5 {strides = array<i32>} : memref<8x768xf32, #tpu.memory_space<vmem>>, vector<8x768xf32>,
    %c0_19 = arith.constant 0 : index
    %c0_20 = arith.constant 0 : index
    %27 = vector.load %arg9[%c0_19, %c0_20] : memref<8x768xf32, #tpu.memory_space<vmem>>, vector<8x768xf32>
    tpu.vector_store %arg9[%c0_19, %c0_20], %7 {strides = array<i32>} : memref<8x768xf32, #tpu.memory_space<vmem>>, vector<8x768xf32>,
    %c0_21 = arith.constant 0 : index
    %c0_22 = arith.constant 0 : index
    %28 = vector.load %arg10[%c0_21, %c0_22] : memref<8x768xf32, #tpu.memory_space<vmem>>, vector<8x768xf32>
    tpu.vector_store %arg10[%c0_21, %c0_22], %9 {strides = array<i32>} : memref<8x768xf32, #tpu.memory_space<vmem>>, vector<8x768xf32>,
    %c0_23 = arith.constant 0 : index
    %c0_24 = arith.constant 0 : index
    %29 = vector.load %arg11[%c0_23, %c0_24] : memref<8x128xf32, #tpu.memory_space<vmem>>, vector<8x128xf32>
    tpu.vector_store %arg11[%c0_23, %c0_24], %15 {strides = array<i32>} : memref<8x128xf32, #tpu.memory_space<vmem>>, vector<8x128xf32>,
    return
  }
  func.func @transform_0(%arg0: i32) -> (i32, i32) {
    %c0_i32 = arith.constant 0 : i32
    %c0_i32_0 = arith.constant 0 : i32
    return %arg0, %c0_i32 : i32, i32
  }
  func.func @transform_1(%arg0: i32) -> (i32, i32) {
    %c0_i32 = arith.constant 0 : i32
    %c0_i32_0 = arith.constant 0 : i32
    %c0_i32_1 = arith.constant 0 : i32
    return %c0_i32, %c0_i32_0 : i32, i32
  }
  func.func @transform_2(%arg0: i32) -> (i32, i32) {
    %c0_i32 = arith.constant 0 : i32
    %c0_i32_0 = arith.constant 0 : i32
    %c0_i32_1 = arith.constant 0 : i32
    return %c0_i32, %c0_i32_0 : i32, i32
  }
  func.func @transform_3(%arg0: i32) -> (i32, i32) {
    %c0_i32 = arith.constant 0 : i32
    %c0_i32_0 = arith.constant 0 : i32
    return %arg0, %c0_i32 : i32, i32
  }
  func.func @transform_4(%arg0: i32) -> (i32, i32) {
    %c0_i32 = arith.constant 0 : i32
    %c0_i32_0 = arith.constant 0 : i32
    %c0_i32_1 = arith.constant 0 : i32
    return %c0_i32, %c0_i32_0 : i32, i32
  }
  func.func @transform_5(%arg0: i32) -> (i32, i32) {
    %c0_i32 = arith.constant 0 : i32
    %c0_i32_0 = arith.constant 0 : i32
    %c0_i32_1 = arith.constant 0 : i32
    return %c0_i32, %c0_i32_0 : i32, i32
  }
  func.func @transform_6(%arg0: i32) -> (i32, i32) {
    %c0_i32 = arith.constant 0 : i32
    %c0_i32_0 = arith.constant 0 : i32
    return %arg0, %c0_i32 : i32, i32
  }
  func.func @transform_7(%arg0: i32) -> (i32, i32) {
    %c0_i32 = arith.constant 0 : i32
    %c0_i32_0 = arith.constant 0 : i32
    return %arg0, %c0_i32 : i32, i32
  }
  func.func @transform_8(%arg0: i32) -> (i32, i32) {
    %c0_i32 = arith.constant 0 : i32
    %c0_i32_0 = arith.constant 0 : i32
    return %arg0, %c0_i32 : i32, i32
  }
  func.func @transform_9(%arg0: i32) -> (i32, i32) {
    %c0_i32 = arith.constant 0 : i32
    %c0_i32_0 = arith.constant 0 : i32
    return %arg0, %c0_i32 : i32, i32
  }
  func.func @transform_10(%arg0: i32) -> (i32, i32) {
    %c0_i32 = arith.constant 0 : i32
    %c0_i32_0 = arith.constant 0 : i32
    return %arg0, %c0_i32 : i32, i32
  }
}

</mosaic_0001>

<bundles_post_ra>
// kernel: tpu_custom_call.1
= control target key start
LH: loop header
LB: loop body
LE: loop exit
PB: predicated region body
PF: predicated region fallthrough
CT: control target
= control target key end

     0   :  { %16 = vsyncpa [#allocation3], 0  ;;  %s4422_s0 = inlined_call_operand.hbm [shape: bf16[8,784], index: 0, kind: input, shape index: {}]   ;;  %s4423_s1 = inlined_call_operand.hbm [shape: bf16[784,768], index: 1, kind: input, shape index: {}]   ;;  %s4424_s2 = inlined_call_operand.hbm [shape: f32[1,768], index: 2, kind: input, shape index: {}]   ;;  %s4425_s3 = inlined_call_operand.hbm [shape: f32[8,768], index: 3, kind: input, shape index: {}]   ;;  %s4426_s4 = inlined_call_operand.hbm [shape: bf16[768,128], index: 4, kind: input, shape index: {}]   ;;  %s4427_s5 = inlined_call_operand.hbm [shape: f32[1,128], index: 5, kind: input, shape index: {}]   ;;  %s4428_s6 = inlined_call_operand.hbm [shape: f32[8,128], index: 6, kind: output, shape index: {0}]   ;;  %s4429_s7 = inlined_call_operand.hbm [shape: f32[8,768], index: 7, kind: output, shape index: {1}]   ;;  %s4430_s8 = inlined_call_operand.hbm [shape: f32[8,768], index: 8, kind: output, shape index: {2}]   ;;  %s4431_s9 = inlined_call_operand.hbm [shape: f32[8,768], index: 9, kind: output, shape index: {3}]   ;;  %s4432_s10 = inlined_call_operand.hbm [shape: f32[8,128], index: 10, kind: output, shape index: {4}]  }
   0x1   :  { %17 = vsyncpa [#allocation6], 0 }
   0x2   :  { %18 = vsyncpa [#allocation9], 0 }
   0x3   :  { %19 = vsyncpa [#allocation12], 0 }
   0x4   :  { %20 = vsyncpa [#allocation4], 0 }
   0x5   :  { %21 = vsyncpa [#allocation15], 0 }
   0x6   :  { %22 = vsyncpa [#allocation18], 0  ;;  %s4232_s13 = smov [#allocation5]  }
   0x7   :  { %s38_s14 = sshll.u32 %s4232_s13, 4  ;;  %s39_s14 = int_to_ptr.vmem [resolvable:$true] %s38_s14 }
   0x8   :  { %s4006_s15 = scalar_lea.vmem %s39_s14, 37632  ;;  %p4011_p1 = scmp.lt.s32.totalorder %s39_s14, %s39_s14 }
   0x9   :  { %p4007_p0 = scmp.ne.s32.totalorder %s39_s14, %s4006_s15  ;;  %p4012_p2 = scmp.lt.s32.totalorder %s4006_s15, %s4006_s15 }
   0xb   :  { %p4013_p3 = por %p4012_p2, %p4011_p1 }
   0xd   :  { %p4014_p4 = pnand %p4013_p3, %p4007_p0 }
   0xf   :  { %4017 = shalt.err (!%p4014_p4)
}
  0x10   :  { %s4233_s16 = smov 384   ;;  %s4234_s17 = smov 24  }
  0x11   :  { %44 = dma.hbm_to_vmem [thread:$0]  %s4423_s1, 37632, %s39_s14, [#allocation6], %s4233_s16, %s4233_s16, %s4234_s17  }
  0x12   :  { %s4235_s20 = smov [#allocation8]   ;;  %s4236_s22 = smov [#allocation2]  }
  0x13   :  { %s61_s21 = sshll.u32 %s4235_s20, 4  ;;  %s29_s23 = sshll.u32 %s4236_s22, 4  ;;  %s62_s21 = int_to_ptr.vmem [resolvable:$true] %s61_s21  ;;  %s30_s23 = int_to_ptr.vmem [resolvable:$true] %s29_s23 }
  0x14   :  { %s4026_s24 = scalar_lea.vmem %s62_s21, 768  ;;  %p4031_p6 = scmp.lt.s32.totalorder %s62_s21, %s62_s21 }
  0x15   :  { %p4027_p5 = scmp.ne.s32.totalorder %s62_s21, %s4026_s24  ;;  %p4032_p7 = scmp.lt.s32.totalorder %s4026_s24, %s4026_s24 }
  0x17   :  { %p4033_p8 = por %p4032_p7, %p4031_p6 }
  0x19   :  { %p4034_p9 = pnand %p4033_p8, %p4027_p5 }
  0x1b   :  { %4037 = shalt.err (!%p4034_p9)
}
  0x1c   :  { %64 = dma.hbm_to_vmem [thread:$0]  %s4425_s3, 768, %s62_s21, [#allocation9]  }
  0x1d   :  { %s4046_s27 = scalar_lea.vmem %s30_s23, 448  ;;  %p4051_p11 = scmp.lt.s32.totalorder %s30_s23, %s30_s23 }
  0x1e   :  { %p4047_p10 = scmp.ne.s32.totalorder %s30_s23, %s4046_s27  ;;  %p4052_p12 = scmp.lt.s32.totalorder %s4046_s27, %s4046_s27 }
  0x20   :  { %p4053_p13 = por %p4052_p12, %p4051_p11 }
  0x22   :  { %p4054_p0 = pnand %p4053_p13, %p4047_p10 }
  0x24   :  { %4057 = shalt.err (!%p4054_p0)
}
  0x25   :  { %32 = dma.hbm_to_vmem [thread:$0]  %s4422_s0, 448, %s30_s23, [#allocation3]  }
  0x26   :  { %s4237_s29 = smov [#allocation7]   ;;  %s4238_s11 = smov [#allocation10]  }
  0x27   :  { %s51_s30 = sshll.u32 %s4237_s29, 4  ;;  %s70_s12 = sshll.u32 %s4238_s11, 4  ;;  %s52_s30 = int_to_ptr.vmem [resolvable:$true] %s51_s30  ;;  %s71_s12 = int_to_ptr.vmem [resolvable:$true] %s70_s12 }
  0x28   :  { %s4066_s13 = scalar_lea.vmem %s52_s30, 96  ;;  %p4071_p2 = scmp.lt.s32.totalorder %s52_s30, %s52_s30 }
  0x29   :  { %p4067_p1 = scmp.ne.s32.totalorder %s52_s30, %s4066_s13  ;;  %p4072_p3 = scmp.lt.s32.totalorder %s4066_s13, %s4066_s13 }
  0x2b   :  { %p4073_p4 = por %p4072_p3, %p4071_p2 }
  0x2d   :  { %p4074_p5 = pnand %p4073_p4, %p4067_p1 }
  0x2f   :  { %4077 = shalt.err (!%p4074_p5)
}
  0x30   :  { %54 = dma.hbm_to_vmem [thread:$0]  %s4424_s2, 96, %s52_s30, [#allocation6]  }
  0x31   :  { %s4086_s15 = scalar_lea.vmem %s71_s12, 6144  ;;  %p4091_p7 = scmp.lt.s32.totalorder %s71_s12, %s71_s12 }
  0x32   :  { %p4087_p6 = scmp.ne.s32.totalorder %s71_s12, %s4086_s15  ;;  %p4092_p8 = scmp.lt.s32.totalorder %s4086_s15, %s4086_s15 }
  0x34   :  { %p4093_p9 = por %p4092_p8, %p4091_p7 }
  0x36   :  { %p4094_p10 = pnand %p4093_p9, %p4087_p6 }
  0x38   :  { %4097 = shalt.err (!%p4094_p10)
}
  0x39   :  { %s4239_s0 = smov 64   ;;  %s4240_s16 = smov 4  }
  0x3a   :  { %76 = dma.hbm_to_vmem [thread:$0]  %s4426_s4, 6144, %s71_s12, [#allocation9], %s4239_s0, %s4239_s0, %s4240_s16  }
  0x3b   :  { %s4241_s19 = smov [#allocation11]  }
  0x3c   :  { %s83_s20 = sshll.u32 %s4241_s19, 4  ;;  %s84_s20 = int_to_ptr.vmem [resolvable:$true] %s83_s20 }
  0x3d   :  { %s4106_s21 = scalar_lea.vmem %s84_s20, 16  ;;  %s4110_s2 = scalar_lea.vmem %s84_s20, 32 }
  0x3e   :  { %p4107_p11 = scmp.ne.s32.totalorder %s84_s20, %s4106_s21  ;;  %p4111_p12 = scmp.lt.s32.totalorder %s84_s20, %s84_s20 }
  0x3f   :  { %p4112_p13 = scmp.lt.s32.totalorder %s4110_s2, %s4106_s21 }
  0x41   :  { %p4113_p0 = por %p4112_p13, %p4111_p12 }
  0x43   :  { %p4114_p1 = pnand %p4113_p0, %p4107_p11 }
  0x45   :  { %4117 = shalt.err (!%p4114_p1)
}
  0x46   :  { %86 = dma.hbm_to_vmem [thread:$0]  %s4427_s5, 16, %s84_s20, [#allocation12]  }
  0x47   :  { %4218 = dma.done.wait [#allocation3], 448  }
  0x48   :  { %4219 = vsyncadd [#allocation3], 4294966848 }
  0x49   :  { %4220 = dma.done.wait [#allocation6], 37728  }
  0x4a   :  { %4221 = vsyncadd [#allocation6], 4294929568 }
  0x4b   :  { %4222 = dma.done.wait [#allocation9], 6912  }
  0x4c   :  { %4223 = vsyncadd [#allocation9], 4294960384 }
  0x4d   :  { %4224 = dma.done.wait [#allocation12], 16  }
  0x4e   :  { %4225 = vsyncadd [#allocation12], 4294967280  ;;  %v3497_v0 = vld [vmem:[#allocation5 + $0x154] ss:$24 sps:$4 sm:$0xff]   ;;  %v3501_v2 = vld [vmem:[#allocation5 + $0x150] ss:$24 sps:$4 sm:$0xff]  }
  0x4f   :  { %v3499_v1 = vld [vmem:[#allocation5 + $0x454] ss:$24 sps:$4 sm:$0xff]   ;;  %1934 = vmatprep.subr.bf16.mxu0 %v3497_v0  ;;  %v3502_v3 = vld [vmem:[#allocation5 + $0x450] ss:$24 sps:$4 sm:$0xff]   ;;  %v3503_v4 = vld [vmem:[#allocation5 + $0x124] ss:$24 sps:$4 sm:$0xff]  }
  0x50   :  { %1975 = vmatprep.subr.bf16.mxu1 %v3499_v1  ;;  %1935 = vmatpush1.bf16.msra.mxu0 %v3501_v2  ;;  %v3505_v5 = vld [vmem:[#allocation5 + $0x424] ss:$24 sps:$4 sm:$0xff]   ;;  %v3507_v6 = vld [vmem:[#allocation5 + $0x120] ss:$24 sps:$4 sm:$0xff]   ;;  %v3509_v8 = vld [vmem:[#allocation5 + $0xf4] ss:$24 sps:$4 sm:$0xff]  }
  0x51   :  { %1976 = vmatpush1.bf16.msra.mxu1 %v3502_v3  ;;  %1936 = vmatprep.subr.bf16.mxu0 %v3503_v4  ;;  %v3508_v7 = vld [vmem:[#allocation5 + $0x420] ss:$24 sps:$4 sm:$0xff]   ;;  %v3511_v9 = vld [vmem:[#allocation5 + $0x3f4] ss:$24 sps:$4 sm:$0xff]   ;;  %v3513_v10 = vld [vmem:[#allocation5 + $0xf0] ss:$24 sps:$4 sm:$0xff]  }
  0x52   :  { %1977 = vmatprep.subr.bf16.mxu1 %v3505_v5  ;;  %v3514_v11 = vld [vmem:[#allocation5 + $0x3f0] ss:$24 sps:$4 sm:$0xff]   ;;  %v3515_v12 = vld [vmem:[#allocation5 + $0xc4] ss:$24 sps:$4 sm:$0xff]   ;;  %v3519_v14 = vld [vmem:[#allocation5 + $0xc0] ss:$24 sps:$4 sm:$0xff]  }
  0x53   :  { %v3517_v13 = vld [vmem:[#allocation5 + $0x3c4] ss:$24 sps:$4 sm:$0xff]   ;;  %v3520_v15 = vld [vmem:[#allocation5 + $0x3c0] ss:$24 sps:$4 sm:$0xff]   ;;  %v3521_v16 = vld [vmem:[#allocation5 + $0x94] ss:$24 sps:$4 sm:$0xff]  }
  0x54   :  { %1937 = vmatpush1.bf16.msra.mxu0 %v3507_v6  ;;  %v3523_v17 = vld [vmem:[#allocation5 + $0x394] ss:$24 sps:$4 sm:$0xff]   ;;  %v3525_v18 = vld [vmem:[#allocation5 + $0x90] ss:$24 sps:$4 sm:$0xff]   ;;  %v3527_v20 = vld [vmem:[#allocation5 + $0x64] ss:$24 sps:$4 sm:$0xff]  }
  0x55   :  { %1978 = vmatpush1.bf16.msra.mxu1 %v3508_v7  ;;  %1938 = vmatprep.subr.bf16.mxu0 %v3509_v8  ;;  %v3526_v19 = vld [vmem:[#allocation5 + $0x390] ss:$24 sps:$4 sm:$0xff]   ;;  %v3529_v21 = vld [vmem:[#allocation5 + $0x364] ss:$24 sps:$4 sm:$0xff]   ;;  %v3531_v22 = vld [vmem:[#allocation5 + $0x60] ss:$24 sps:$4 sm:$0xff]  }
  0x56   :  { %1979 = vmatprep.subr.bf16.mxu1 %v3511_v9  ;;  %v3532_v23 = vld [vmem:[#allocation5 + $0x360] ss:$24 sps:$4 sm:$0xff]   ;;  %v3533_v24 = vld [vmem:[#allocation5 + $0x34] ss:$24 sps:$4 sm:$0xff]   ;;  %v3537_v26 = vld [vmem:[#allocation5 + $0x30] ss:$24 sps:$4 sm:$0xff]  }
  0x57   :  { %v3535_v25 = vld [vmem:[#allocation5 + $0x334] ss:$24 sps:$4 sm:$0xff]   ;;  %v3538_v27 = vld [vmem:[#allocation5 + $0x330] ss:$24 sps:$4 sm:$0xff]   ;;  %v3539_v28 = vld [vmem:[#allocation5 + $0x4] ss:$24 sps:$4 sm:$0xff]  }
  0x58   :  { %1939 = vmatpush1.bf16.msra.mxu0 %v3513_v10  ;;  %v3541_v29 = vld [vmem:[#allocation5 + $0x304] ss:$24 sps:$4 sm:$0xff]   ;;  %v3543_v30 = vld [vmem:[#allocation5] ss:$24 sps:$4 sm:$0xff]   ;;  %v3545_v32 = vld [vmem:[#allocation5 + $0x2d4] ss:$24 sps:$4 sm:$0xff]  }
  0x59   :  { %1980 = vmatpush1.bf16.msra.mxu1 %v3514_v11  ;;  %1940 = vmatprep.subr.bf16.mxu0 %v3515_v12  ;;  %v3544_v31 = vld [vmem:[#allocation5 + $0x300] ss:$24 sps:$4 sm:$0xff]   ;;  %v3547_v33 = vld [vmem:[#allocation5 + $0x5d4] ss:$24 sps:$4 sm:$0xff]   ;;  %v3549_v34 = vld [vmem:[#allocation5 + $0x2d0] ss:$24 sps:$4 sm:$0xff]  }
  0x5a   :  { %1981 = vmatprep.subr.bf16.mxu1 %v3517_v13  ;;  %v3550_v35 = vld [vmem:[#allocation5 + $0x5d0] ss:$24 sps:$4 sm:$0xff]   ;;  %v3551_v36 = vld [vmem:[#allocation5 + $0x2a4] ss:$24 sps:$4 sm:$0xff]   ;;  %v3555_v38 = vld [vmem:[#allocation5 + $0x2a0] ss:$24 sps:$4 sm:$0xff]  }
  0x5b   :  { %v3553_v37 = vld [vmem:[#allocation5 + $0x5a4] ss:$24 sps:$4 sm:$0xff]   ;;  %v3556_v39 = vld [vmem:[#allocation5 + $0x5a0] ss:$24 sps:$4 sm:$0xff]   ;;  %v3557_v40 = vld [vmem:[#allocation5 + $0x274] ss:$24 sps:$4 sm:$0xff]  }
  0x5c   :  { %1941 = vmatpush1.bf16.msra.mxu0 %v3519_v14  ;;  %v3559_v41 = vld [vmem:[#allocation5 + $0x574] ss:$24 sps:$4 sm:$0xff]   ;;  %v3561_v42 = vld [vmem:[#allocation5 + $0x270] ss:$24 sps:$4 sm:$0xff]   ;;  %v3563_v44 = vld [vmem:[#allocation5 + $0x244] ss:$24 sps:$4 sm:$0xff]  }
  0x5d   :  { %1982 = vmatpush1.bf16.msra.mxu1 %v3520_v15  ;;  %1942 = vmatprep.subr.bf16.mxu0 %v3521_v16  ;;  %v3562_v43 = vld [vmem:[#allocation5 + $0x570] ss:$24 sps:$4 sm:$0xff]   ;;  %v3565_v45 = vld [vmem:[#allocation5 + $0x544] ss:$24 sps:$4 sm:$0xff]   ;;  %v3567_v49 = vld [vmem:[#allocation5 + $0x240] ss:$24 sps:$4 sm:$0xff]  }
  0x5e   :  { %1983 = vmatprep.subr.bf16.mxu1 %v3523_v17  ;;  %v106_v46 = vld [vmem:[#allocation2] sm:$0xff]  ;;  %v107_v48 = vld [vmem:[#allocation2 + $0x8] sm:$0xff]  ;;  %v3568_v50 = vld [vmem:[#allocation5 + $0x540] ss:$24 sps:$4 sm:$0xff]   ;;  %v4242_v13 = vmov 0   ;;  %vm1930_vm0 = vcmask 130048  }
  0x5f   :  { %v4321_v47 = vcombine.high %v106_v46, %v106_v46  ;;  %v4323_v51 = vcombine.high %v107_v48, %v107_v48  ;;  %v3569_v52 = vld [vmem:[#allocation5 + $0x214] ss:$24 sps:$4 sm:$0xff]   ;;  %v3573_v54 = vld [vmem:[#allocation5 + $0x210] ss:$24 sps:$4 sm:$0xff]   ;;  %v3575_v56 = vld [vmem:[#allocation5 + $0x1e4] ss:$24 sps:$4 sm:$0xff]   ;;  %v4327_v6 = vcombine.low %v106_v46, %v106_v46  ;;  %v4329_v7 = vcombine.low %v107_v48, %v107_v48 }
  0x60   :  { %1943 = vmatpush1.bf16.msra.mxu0 %v3525_v18  ;;  %v3571_v53 = vld [vmem:[#allocation5 + $0x514] ss:$24 sps:$4 sm:$0xff]   ;;  %v3574_v55 = vld [vmem:[#allocation5 + $0x510] ss:$24 sps:$4 sm:$0xff]   ;;  %v3577_v57 = vld [vmem:[#allocation5 + $0x4e4] ss:$24 sps:$4 sm:$0xff]  }
  0x61   :  { %1984 = vmatpush1.bf16.msra.mxu1 %v3526_v19  ;;  %1944 = vmatprep.subr.bf16.mxu0 %v3527_v20  ;;  %v3579_v58 = vld [vmem:[#allocation5 + $0x1e0] ss:$24 sps:$4 sm:$0xff]   ;;  %v3581_v60 = vld [vmem:[#allocation5 + $0x1b4] ss:$24 sps:$4 sm:$0xff]   ;;  %v3585_v62 = vld [vmem:[#allocation5 + $0x1b0] ss:$24 sps:$4 sm:$0xff]  }
  0x62   :  { %1985 = vmatprep.subr.bf16.mxu1 %v3529_v21  ;;  %1966 = vmatprep.mubr.bf16.mxu0 %v4321_v47  ;;  %v3580_v59 = vld [vmem:[#allocation5 + $0x4e0] ss:$24 sps:$4 sm:$0xff]   ;;  %v3583_v61 = vld [vmem:[#allocation5 + $0x4b4] ss:$24 sps:$4 sm:$0xff]   ;;  %v3586_v63 = vld [vmem:[#allocation5 + $0x4b0] ss:$24 sps:$4 sm:$0xff]  }
  0x63   :  { %2007 = vmatprep.mubr.bf16.mxu1 %v4323_v51  ;;  %v3587_v0 = vld [vmem:[#allocation5 + $0x184] ss:$24 sps:$4 sm:$0xff]   ;;  %v3591_v2 = vld [vmem:[#allocation5 + $0x180] ss:$24 sps:$4 sm:$0xff]   ;;  %v3599_v4 = vld [vmem:[#allocation5 + $0x754] ss:$24 sps:$4 sm:$0xff]  }
  0x64   :  { %1945 = vmatpush1.bf16.msra.mxu0 %v3531_v22  ;;  %v3589_v1 = vld [vmem:[#allocation5 + $0x484] ss:$24 sps:$4 sm:$0xff]   ;;  %v3592_v3 = vld [vmem:[#allocation5 + $0x480] ss:$24 sps:$4 sm:$0xff]   ;;  %v3597_v8 = vld [vmem:[#allocation5 + $0x750] ss:$24 sps:$4 sm:$0xff]  }
  0x65   :  { %1986 = vmatpush1.bf16.msra.mxu1 %v3532_v23  ;;  %1946 = vmatprep.subr.bf16.mxu0 %v3533_v24  ;;  %v3602_v5 = vld [vmem:[#allocation5 + $0x904] ss:$24 sps:$4 sm:$0xff]   ;;  %v3600_v9 = vld [vmem:[#allocation5 + $0x900] ss:$24 sps:$4 sm:$0xff]   ;;  %v3611_v14 = vld [vmem:[#allocation5 + $0x6f4] ss:$24 sps:$4 sm:$0xff]  }
  0x66   :  { %1987 = vmatprep.subr.bf16.mxu1 %v3535_v25  ;;  %v3605_v10 = vld [vmem:[#allocation5 + $0x724] ss:$24 sps:$4 sm:$0xff]   ;;  %v3603_v12 = vld [vmem:[#allocation5 + $0x720] ss:$24 sps:$4 sm:$0xff]   ;;  %v3609_v16 = vld [vmem:[#allocation5 + $0x6f0] ss:$24 sps:$4 sm:$0xff]  }
  0x67   :  { %v3608_v11 = vld [vmem:[#allocation5 + $0x15c] ss:$24 sps:$4 sm:$0xff]   ;;  %v3606_v15 = vld [vmem:[#allocation5 + $0x158] ss:$24 sps:$4 sm:$0xff]   ;;  %v3615_v18 = vld [vmem:[#allocation5 + $0x12c] ss:$24 sps:$4 sm:$0xff]  }
  0x68   :  { %1947 = vmatpush1.bf16.msra.mxu0 %v3537_v26  ;;  %v4334_v17 = vld [vmem:[#allocation2 + $0x18] ss:$0 sps:$4 sm:$0xff]   ;;  %v3613_v20 = vld [vmem:[#allocation5 + $0x128] ss:$24 sps:$4 sm:$0xff]   ;;  %v3624_v23 = vld [vmem:[#allocation5 + $0x694] ss:$24 sps:$4 sm:$0xff]  }
  0x69   :  { %1988 = vmatpush1.bf16.msra.mxu1 %v3538_v27  ;;  %1948 = vmatprep.subr.bf16.mxu0 %v3539_v28  ;;  %v3618_v19 = vld [vmem:[#allocation5 + $0x6c4] ss:$24 sps:$4 sm:$0xff]   ;;  %v3616_v21 = vld [vmem:[#allocation5 + $0x6c0] ss:$24 sps:$4 sm:$0xff]   ;;  %v3622_v25 = vld [vmem:[#allocation5 + $0x690] ss:$24 sps:$4 sm:$0xff]  }
  0x6a   :  { %1989 = vmatprep.subr.bf16.mxu1 %v3541_v29  ;;  %v3621_v22 = vld [vmem:[#allocation5 + $0xfc] ss:$24 sps:$4 sm:$0xff]   ;;  %v3619_v24 = vld [vmem:[#allocation5 + $0xf8] ss:$24 sps:$4 sm:$0xff]   ;;  %v3627_v26 = vld [vmem:[#allocation5 + $0xcc] ss:$24 sps:$4 sm:$0xff]  }
  0x6b   :  { %v3630_v27 = vld [vmem:[#allocation5 + $0x664] ss:$24 sps:$4 sm:$0xff]   ;;  %v3625_v28 = vld [vmem:[#allocation5 + $0xc8] ss:$24 sps:$4 sm:$0xff]   ;;  %s4243_s4 = smov [#allocation14]   ;;  %s4244_s24 = smov [#allocation17]  }
  0x6c   :  { %1949 = vmatpush1.bf16.msra.mxu0 %v3543_v30  ;;  %v3628_v29 = vld [vmem:[#allocation5 + $0x660] ss:$24 sps:$4 sm:$0xff]   ;;  %v3633_v30 = vld [vmem:[#allocation5 + $0x9c] ss:$24 sps:$4 sm:$0xff]   ;;  %s3006_s5 = sshll.u32 %s4243_s4, 4  ;;  %s3026_s25 = sshll.u32 %s4244_s24, 4  ;;  %s3007_s5 = int_to_ptr.vmem [resolvable:$true] %s3006_s5  ;;  %s3027_s25 = int_to_ptr.vmem [resolvable:$true] %s3026_s25 }
  0x6d   :  { %1990 = vmatpush1.bf16.msra.mxu1 %v3544_v31  ;;  %1950 = vmatprep.subr.bf16.mxu0 %v3545_v32  ;;  %v3636_v31 = vld [vmem:[#allocation5 + $0x634] ss:$24 sps:$4 sm:$0xff]   ;;  %v3649_v46 = vld [vmem:[#allocation5 + $0x8] ss:$24 sps:$4 sm:$0xff]   ;;  %s4118_s26 = scalar_lea.vmem %s3007_s5, 768  ;;  %p4123_p3 = scmp.lt.s32.totalorder %s3007_s5, %s3007_s5 }
  0x6e   :  { %1991 = vmatprep.subr.bf16.mxu1 %v3547_v33  ;;  %v4339_v32 = vld [vmem:[#allocation2 + $0x10] sm:$0xff]  ;;  %p4119_p2 = scmp.ne.s32.totalorder %s3007_s5, %s4118_s26  ;;  %p4124_p4 = scmp.lt.s32.totalorder %s4118_s26, %s4118_s26 }
  0x6f   :  { %v4343_v33 = vcombine.high %v4339_v32, %v4339_v32  ;;  %v3652_v48 = vld [vmem:[#allocation5 + $0x8a0] ss:$24 sps:$4 sm:$0xff]  }
  0x70   :  { %1951 = vmatpush2.bf16.msra.mxu0 %v3549_v34  ;;  %v3631_v34 = vld [vmem:[#allocation5 + $0x98] ss:$24 sps:$4 sm:$0xff]   ;;  %p4125_p5 = por %p4124_p4, %p4123_p3 }
  0x71   :  { %1992 = vmatpush2.bf16.msra.mxu1 %v3550_v35  ;;  %1952 = vmatprep.subr.bf16.mxu0 %v3551_v36  ;;  %v3634_v35 = vld [vmem:[#allocation5 + $0x630] ss:$24 sps:$4 sm:$0xff]   ;;  %v3639_v36 = vld [vmem:[#allocation5 + $0x6c] ss:$24 sps:$4 sm:$0xff]  }
  0x72   :  { %1993 = vmatprep.subr.bf16.mxu1 %v3553_v37  ;;  %v3642_v37 = vld [vmem:[#allocation5 + $0x604] ss:$24 sps:$4 sm:$0xff]   ;;  %p4126_p6 = pnand %p4125_p5, %p4119_p2 }
  0x74   :  { %1953 = vmatpush2.bf16.msra.mxu0 %v3555_v38  ;;  %v3637_v38 = vld [vmem:[#allocation5 + $0x68] ss:$24 sps:$4 sm:$0xff]  }
  0x75   :  { %1994 = vmatpush2.bf16.msra.mxu1 %v3556_v39  ;;  %1954 = vmatprep.subr.bf16.mxu0 %v3557_v40  ;;  %v3640_v39 = vld [vmem:[#allocation5 + $0x600] ss:$24 sps:$4 sm:$0xff]   ;;  %v3645_v40 = vld [vmem:[#allocation5 + $0x3c] ss:$24 sps:$4 sm:$0xff]  }
  0x76   :  { %1995 = vmatprep.subr.bf16.mxu1 %v3559_v41  ;;  %v3648_v41 = vld [vmem:[#allocation5 + $0x8d4] ss:$24 sps:$4 sm:$0xff]  }
  0x78   :  { %1955 = vmatpush2.bf16.msra.mxu0 %v3561_v42  ;;  %v3643_v42 = vld [vmem:[#allocation5 + $0x38] ss:$24 sps:$4 sm:$0xff]  }
  0x79   :  { %1996 = vmatpush2.bf16.msra.mxu1 %v3562_v43  ;;  %1956 = vmatprep.subr.bf16.mxu0 %v3563_v44  ;;  %v3646_v43 = vld [vmem:[#allocation5 + $0x8d0] ss:$24 sps:$4 sm:$0xff]   ;;  %v3651_v44 = vld [vmem:[#allocation5 + $0xc] ss:$24 sps:$4 sm:$0xff]  }
  0x7a   :  { %1997 = vmatprep.subr.bf16.mxu1 %v3565_v45  ;;  %v3654_v45 = vld [vmem:[#allocation5 + $0x8a4] ss:$24 sps:$4 sm:$0xff]  }
  0x7c   :  { %1957 = vmatpush2.bf16.msra.mxu0 %v3567_v49  ;;  %v3657_v49 = vld [vmem:[#allocation5 + $0x2dc] ss:$24 sps:$4 sm:$0xff]  }
  0x7d   :  { %1998 = vmatpush2.bf16.msra.mxu1 %v3568_v50  ;;  %1958 = vmatprep.subr.bf16.mxu0 %v3569_v52  ;;  %v3660_v50 = vld [vmem:[#allocation5 + $0x874] ss:$24 sps:$4 sm:$0xff]   ;;  %v3655_v52 = vld [vmem:[#allocation5 + $0x2d8] ss:$24 sps:$4 sm:$0xff]  }
  0x7e   :  { %1999 = vmatprep.subr.bf16.mxu1 %v3571_v53  ;;  %v3658_v53 = vld [vmem:[#allocation5 + $0x870] ss:$24 sps:$4 sm:$0xff]  }
  0x80   :  { %1959 = vmatpush2.bf16.msra.mxu0 %v3573_v54  ;;  %v3663_v54 = vld [vmem:[#allocation5 + $0x2ac] ss:$24 sps:$4 sm:$0xff]  }
  0x81   :  { %2000 = vmatpush2.bf16.msra.mxu1 %v3574_v55  ;;  %1960 = vmatprep.subr.bf16.mxu0 %v3575_v56  ;;  %v3666_v55 = vld [vmem:[#allocation5 + $0x844] ss:$24 sps:$4 sm:$0xff]   ;;  %v3661_v56 = vld [vmem:[#allocation5 + $0x2a8] ss:$24 sps:$4 sm:$0xff]  }
  0x82   :  { %2001 = vmatprep.subr.bf16.mxu1 %v3577_v57  ;;  %v3664_v57 = vld [vmem:[#allocation5 + $0x840] ss:$24 sps:$4 sm:$0xff]  }
  0x84   :  { %1961 = vmatpush2.bf16.msra.mxu0 %v3579_v58  ;;  %v3669_v58 = vld [vmem:[#allocation5 + $0x27c] ss:$24 sps:$4 sm:$0xff]  }
  0x85   :  { %2002 = vmatpush2.bf16.msra.mxu1 %v3580_v59  ;;  %1962 = vmatprep.subr.bf16.mxu0 %v3581_v60  ;;  %v3672_v59 = vld [vmem:[#allocation5 + $0x814] ss:$24 sps:$4 sm:$0xff]   ;;  %v3667_v60 = vld [vmem:[#allocation5 + $0x278] ss:$24 sps:$4 sm:$0xff]  }
  0x86   :  { %2003 = vmatprep.subr.bf16.mxu1 %v3583_v61  ;;  %v3670_v61 = vld [vmem:[#allocation5 + $0x810] ss:$24 sps:$4 sm:$0xff]  }
  0x88   :  { %1963 = vmatpush2.bf16.msra.mxu0 %v3585_v62  ;;  %v3675_v62 = vld [vmem:[#allocation5 + $0x24c] ss:$24 sps:$4 sm:$0xff]  }
  0x89   :  { %2004 = vmatpush2.bf16.msra.mxu1 %v3586_v63  ;;  %1964 = vmatprep.subr.bf16.mxu0 %v3587_v0  ;;  %v3678_v63 = vld [vmem:[#allocation5 + $0x7e4] ss:$24 sps:$4 sm:$0xff]   ;;  %v3673_v0 = vld [vmem:[#allocation5 + $0x248] ss:$24 sps:$4 sm:$0xff]  }
  0x8a   :  { %2005 = vmatprep.subr.bf16.mxu1 %v3589_v1  ;;  %v3676_v1 = vld [vmem:[#allocation5 + $0x7e0] ss:$24 sps:$4 sm:$0xff]  }
  0x8c   :  { %1965 = vmatpush2.bf16.msra.mxu0 %v3591_v2  ;;  %v3681_v2 = vld [vmem:[#allocation5 + $0x21c] ss:$24 sps:$4 sm:$0xff]  }
  0x8d   :  { %2006 = vmatpush2.bf16.msra.mxu1 %v3592_v3  ;;  %2016 = vmatprep.subr.bf16.mxu0 %v3599_v4  ;;  %v3684_v3 = vld [vmem:[#allocation5 + $0x7b4] ss:$24 sps:$4 sm:$0xff]   ;;  %v3679_v4 = vld [vmem:[#allocation5 + $0x218] ss:$24 sps:$4 sm:$0xff]  }
  0x8e   :  { %2071 = vmatprep.subr.bf16.mxu1 %v3602_v5  ;;  %v3682_v5 = vld [vmem:[#allocation5 + $0x7b0] ss:$24 sps:$4 sm:$0xff]  }
  0x8f   :  { %1967 = vmatmul.mubr.bf16.vlgmr.msra.gmra.mxu0 %v4327_v6 }
  0x90   :  { %2008 = vmatmul.mubr.bf16.vlgmr.msra.gmra.mxu1 %v4329_v7  ;;  %2017 = vmatpush1.bf16.msra.mxu0 %v3597_v8  ;;  %v3687_v8 = vld [vmem:[#allocation5 + $0x1ec] ss:$24 sps:$4 sm:$0xff]  }
  0x91   :  { %2072 = vmatpush1.bf16.msra.mxu1 %v3600_v9  ;;  %2018 = vmatprep.subr.bf16.mxu0 %v3605_v10  ;;  %v3690_v9 = vld [vmem:[#allocation5 + $0x784] ss:$24 sps:$4 sm:$0xff]   ;;  %v3685_v10 = vld [vmem:[#allocation5 + $0x1e8] ss:$24 sps:$4 sm:$0xff]  }
  0x92   :  { %2089 = vmatprep.mubr.bf16.mxu1 %v4242_v13  ;;  %2098 = vmatprep.subr.bf16.mxu1 %v3608_v11  ;;  %v3688_v11 = vld [vmem:[#allocation5 + $0x780] ss:$24 sps:$4 sm:$0xff]  }
  0x93   :  { %2048 = vmatprep.mubr.bf16.mxu0 %v4343_v33 }
  0x94   :  { %2019 = vmatpush1.bf16.msra.mxu0 %v3603_v12  ;;  %v3695_v12 = vld [vmem:[#allocation5 + $0x1bc] ss:$24 sps:$4 sm:$0xff]  }
  0x95   :  { %2020 = vmatprep.subr.bf16.mxu0 %v3611_v14  ;;  %v3698_v14 = vld [vmem:[#allocation5 + $0x45c] ss:$24 sps:$4 sm:$0xff]  }
  0x98   :  { %3363 = vmatmul.mubr.msk.bf16.vlgmr.msra.gmra.mxu1 %vm1930_vm0, %v4334_v17  ;;  %2021 = vmatpush1.bf16.msra.mxu0 %v3609_v16  ;;  %v3693_v16 = vld [vmem:[#allocation5 + $0x1b8] ss:$24 sps:$4 sm:$0xff]  }
  0x99   :  { %2099 = vmatpush1.bf16.msra.mxu1 %v3606_v15  ;;  %2022 = vmatprep.subr.bf16.mxu0 %v3618_v19  ;;  %v4348_v15 = vcombine.low %v4339_v32, %v4339_v32  ;;  %v3701_v19 = vld [vmem:[#allocation5 + $0x18c] ss:$24 sps:$4 sm:$0xff]   ;;  %v3722_v32 = vld [vmem:[#allocation5 + $0x39c] ss:$24 sps:$4 sm:$0xff]  }
  0x9a   :  { %2100 = vmatprep.subr.bf16.mxu1 %v3615_v18  ;;  %2130 = vmatprep.mubr.bf16.mxu1 %v4321_v47  ;;  %v3696_v18 = vld [vmem:[#allocation5 + $0x458] ss:$24 sps:$4 sm:$0xff]  }
  0x9c   :  { %2023 = vmatpush1.bf16.msra.mxu0 %v3616_v21  ;;  %v3699_v21 = vld [vmem:[#allocation5 + $0x188] ss:$24 sps:$4 sm:$0xff]  }
  0x9d   :  { %2101 = vmatpush1.bf16.msra.mxu1 %v3613_v20  ;;  %2024 = vmatprep.subr.bf16.mxu0 %v3624_v23  ;;  %v3704_v20 = vld [vmem:[#allocation5 + $0x42c] ss:$24 sps:$4 sm:$0xff]   ;;  %v3707_v23 = vld [vmem:[#allocation5 + $0x75c] ss:$24 sps:$4 sm:$0xff]  }
  0x9e   :  { %2102 = vmatprep.subr.bf16.mxu1 %v3621_v22  ;;  %v3702_v22 = vld [vmem:[#allocation5 + $0x428] ss:$24 sps:$4 sm:$0xff]  }
  0xa0   :  { %2025 = vmatpush1.bf16.msra.mxu0 %v3622_v25  ;;  %v3705_v25 = vld [vmem:[#allocation5 + $0x758] ss:$24 sps:$4 sm:$0xff]  }
  0xa1   :  { %2103 = vmatpush1.bf16.msra.mxu1 %v3619_v24  ;;  %2026 = vmatprep.subr.bf16.mxu0 %v3630_v27  ;;  %v3710_v24 = vld [vmem:[#allocation5 + $0x3fc] ss:$24 sps:$4 sm:$0xff]   ;;  %v3713_v27 = vld [vmem:[#allocation5 + $0x72c] ss:$24 sps:$4 sm:$0xff]  }
  0xa2   :  { %2104 = vmatprep.subr.bf16.mxu1 %v3627_v26  ;;  %v3708_v26 = vld [vmem:[#allocation5 + $0x3f8] ss:$24 sps:$4 sm:$0xff]  }
  0xa4   :  { %2027 = vmatpush1.bf16.msra.mxu0 %v3628_v29  ;;  %v3711_v29 = vld [vmem:[#allocation5 + $0x728] ss:$24 sps:$4 sm:$0xff]  }
  0xa5   :  { %2105 = vmatpush1.bf16.msra.mxu1 %v3625_v28  ;;  %2028 = vmatprep.subr.bf16.mxu0 %v3636_v31  ;;  %v3716_v28 = vld [vmem:[#allocation5 + $0x3cc] ss:$24 sps:$4 sm:$0xff]   ;;  %v3719_v31 = vld [vmem:[#allocation5 + $0x6fc] ss:$24 sps:$4 sm:$0xff]  }
  0xa6   :  { %2106 = vmatprep.subr.bf16.mxu1 %v3633_v30  ;;  %v3714_v30 = vld [vmem:[#allocation5 + $0x3c8] ss:$24 sps:$4 sm:$0xff]  }
  0xa8   :  { %2029 = vmatpush1.bf16.msra.mxu0 %v3634_v35  ;;  %v3720_v35 = vld [vmem:[#allocation5 + $0x398] ss:$24 sps:$4 sm:$0xff]  }
  0xa9   :  { %2107 = vmatpush1.bf16.msra.mxu1 %v3631_v34  ;;  %2030 = vmatprep.subr.bf16.mxu0 %v3642_v37  ;;  %v3717_v34 = vld [vmem:[#allocation5 + $0x6f8] ss:$24 sps:$4 sm:$0xff]   ;;  %v3728_v37 = vld [vmem:[#allocation5 + $0x36c] ss:$24 sps:$4 sm:$0xff]  }
  0xaa   :  { %2108 = vmatprep.subr.bf16.mxu1 %v3639_v36  ;;  %v3725_v36 = vld [vmem:[#allocation5 + $0x6cc] ss:$24 sps:$4 sm:$0xff]  }
  0xac   :  { %2031 = vmatpush1.bf16.msra.mxu0 %v3640_v39  ;;  %v3726_v39 = vld [vmem:[#allocation5 + $0x368] ss:$24 sps:$4 sm:$0xff]  }
  0xad   :  { %2109 = vmatpush1.bf16.msra.mxu1 %v3637_v38  ;;  %2032 = vmatprep.subr.bf16.mxu0 %v3648_v41  ;;  %v3723_v38 = vld [vmem:[#allocation5 + $0x6c8] ss:$24 sps:$4 sm:$0xff]   ;;  %v3734_v41 = vld [vmem:[#allocation5 + $0x33c] ss:$24 sps:$4 sm:$0xff]  }
  0xae   :  { %2110 = vmatprep.subr.bf16.mxu1 %v3645_v40  ;;  %v3731_v40 = vld [vmem:[#allocation5 + $0x69c] ss:$24 sps:$4 sm:$0xff]  }
  0xb0   :  { %2033 = vmatpush2.bf16.msra.mxu0 %v3646_v43  ;;  %v3732_v43 = vld [vmem:[#allocation5 + $0x338] ss:$24 sps:$4 sm:$0xff]  }
  0xb1   :  { %2111 = vmatpush1.bf16.msra.mxu1 %v3643_v42  ;;  %2034 = vmatprep.subr.bf16.mxu0 %v3654_v45  ;;  %v3729_v42 = vld [vmem:[#allocation5 + $0x698] ss:$24 sps:$4 sm:$0xff]   ;;  %v3740_v45 = vld [vmem:[#allocation5 + $0x30c] ss:$24 sps:$4 sm:$0xff]  }
  0xb2   :  { %2112 = vmatprep.subr.bf16.mxu1 %v3651_v44  ;;  %v3737_v44 = vld [vmem:[#allocation5 + $0x66c] ss:$24 sps:$4 sm:$0xff]  }
  0xb4   :  { %2035 = vmatpush2.bf16.msra.mxu0 %v3652_v48  ;;  %v3738_v48 = vld [vmem:[#allocation5 + $0x308] ss:$24 sps:$4 sm:$0xff]  }
  0xb5   :  { %2113 = vmatpush1.bf16.msra.mxu1 %v3649_v46  ;;  %2036 = vmatprep.subr.bf16.mxu0 %v3660_v50  ;;  %v3735_v46 = vld [vmem:[#allocation5 + $0x668] ss:$24 sps:$4 sm:$0xff]   ;;  %v3746_v50 = vld [vmem:[#allocation5 + $0x5dc] ss:$24 sps:$4 sm:$0xff]  }
  0xb6   :  { %2114 = vmatprep.subr.bf16.mxu1 %v3657_v49  ;;  %v3743_v49 = vld [vmem:[#allocation5 + $0x63c] ss:$24 sps:$4 sm:$0xff]  }
  0xb8   :  { %2037 = vmatpush2.bf16.msra.mxu0 %v3658_v53  ;;  %v3744_v53 = vld [vmem:[#allocation5 + $0x5d8] ss:$24 sps:$4 sm:$0xff]  }
  0xb9   :  { %2115 = vmatpush2.bf16.msra.mxu1 %v3655_v52  ;;  %2038 = vmatprep.subr.bf16.mxu0 %v3666_v55  ;;  %v3741_v52 = vld [vmem:[#allocation5 + $0x638] ss:$24 sps:$4 sm:$0xff]   ;;  %v3752_v55 = vld [vmem:[#allocation5 + $0x5ac] ss:$24 sps:$4 sm:$0xff]  }
  0xba   :  { %2116 = vmatprep.subr.bf16.mxu1 %v3663_v54  ;;  %v3749_v54 = vld [vmem:[#allocation5 + $0x60c] ss:$24 sps:$4 sm:$0xff]  }
  0xbc   :  { %2039 = vmatpush2.bf16.msra.mxu0 %v3664_v57  ;;  %v3750_v57 = vld [vmem:[#allocation5 + $0x5a8] ss:$24 sps:$4 sm:$0xff]  }
  0xbd   :  { %2117 = vmatpush2.bf16.msra.mxu1 %v3661_v56  ;;  %2040 = vmatprep.subr.bf16.mxu0 %v3672_v59  ;;  %v3747_v56 = vld [vmem:[#allocation5 + $0x608] ss:$24 sps:$4 sm:$0xff]   ;;  %v3758_v59 = vld [vmem:[#allocation5 + $0x57c] ss:$24 sps:$4 sm:$0xff]  }
  0xbe   :  { %2118 = vmatprep.subr.bf16.mxu1 %v3669_v58  ;;  %v3755_v58 = vld [vmem:[#allocation5 + $0x8dc] ss:$24 sps:$4 sm:$0xff]  }
  0xc0   :  { %2041 = vmatpush2.bf16.msra.mxu0 %v3670_v61  ;;  %v3756_v61 = vld [vmem:[#allocation5 + $0x578] ss:$24 sps:$4 sm:$0xff]  }
  0xc1   :  { %2119 = vmatpush2.bf16.msra.mxu1 %v3667_v60  ;;  %2042 = vmatprep.subr.bf16.mxu0 %v3678_v63  ;;  %v3753_v60 = vld [vmem:[#allocation5 + $0x8d8] ss:$24 sps:$4 sm:$0xff]   ;;  %v3764_v63 = vld [vmem:[#allocation5 + $0x54c] ss:$24 sps:$4 sm:$0xff]  }
  0xc2   :  { %2120 = vmatprep.subr.bf16.mxu1 %v3675_v62  ;;  %v3761_v62 = vld [vmem:[#allocation5 + $0x8ac] ss:$24 sps:$4 sm:$0xff]  }
  0xc4   :  { %2043 = vmatpush2.bf16.msra.mxu0 %v3676_v1  ;;  %v3762_v1 = vld [vmem:[#allocation5 + $0x548] ss:$24 sps:$4 sm:$0xff]  }
  0xc5   :  { %2121 = vmatpush2.bf16.msra.mxu1 %v3673_v0  ;;  %2044 = vmatprep.subr.bf16.mxu0 %v3684_v3  ;;  %v3759_v0 = vld [vmem:[#allocation5 + $0x8a8] ss:$24 sps:$4 sm:$0xff]   ;;  %v3770_v3 = vld [vmem:[#allocation5 + $0x51c] ss:$24 sps:$4 sm:$0xff]  }
  0xc6   :  { %2122 = vmatprep.subr.bf16.mxu1 %v3681_v2  ;;  %v3767_v2 = vld [vmem:[#allocation5 + $0x87c] ss:$24 sps:$4 sm:$0xff]  }
  0xc8   :  { %2045 = vmatpush2.bf16.msra.mxu0 %v3682_v5  ;;  %v3768_v5 = vld [vmem:[#allocation5 + $0x518] ss:$24 sps:$4 sm:$0xff]  }
  0xc9   :  { %2123 = vmatpush2.bf16.msra.mxu1 %v3679_v4  ;;  %2046 = vmatprep.subr.bf16.mxu0 %v3690_v9  ;;  %v3765_v4 = vld [vmem:[#allocation5 + $0x878] ss:$24 sps:$4 sm:$0xff]   ;;  %v3776_v9 = vld [vmem:[#allocation5 + $0x4ec] ss:$24 sps:$4 sm:$0xff]  }
  0xca   :  { %2124 = vmatprep.subr.bf16.mxu1 %v3687_v8  ;;  %v3773_v8 = vld [vmem:[#allocation5 + $0x84c] ss:$24 sps:$4 sm:$0xff]  }
  0xcc   :  { %2047 = vmatpush2.bf16.msra.mxu0 %v3688_v11  ;;  %v3774_v11 = vld [vmem:[#allocation5 + $0x4e8] ss:$24 sps:$4 sm:$0xff]  }
  0xcd   :  { %2125 = vmatpush2.bf16.msra.mxu1 %v3685_v10  ;;  %2139 = vmatprep.subr.bf16.mxu0 %v3698_v14  ;;  %v3771_v10 = vld [vmem:[#allocation5 + $0x848] ss:$24 sps:$4 sm:$0xff]   ;;  %v3782_v14 = vld [vmem:[#allocation5 + $0x4bc] ss:$24 sps:$4 sm:$0xff]  }
  0xce   :  { %2126 = vmatprep.subr.bf16.mxu1 %v3695_v12  ;;  %v3779_v12 = vld [vmem:[#allocation5 + $0x81c] ss:$24 sps:$4 sm:$0xff]  }
  0xcf   :  { %2049 = vmatmul.mubr.bf16.vlgmr.msra.gmra.mxu0 %v4348_v15 }
  0xd0   :  { %2140 = vmatpush1.bf16.msra.mxu0 %v3696_v18  ;;  %2171 = vmatprep.mubr.bf16.mxu0 %v4323_v51  ;;  %v3780_v18 = vld [vmem:[#allocation5 + $0x4b8] ss:$24 sps:$4 sm:$0xff]  }
  0xd1   :  { %2127 = vmatpush2.bf16.msra.mxu1 %v3693_v16  ;;  %2141 = vmatprep.subr.bf16.mxu0 %v3704_v20  ;;  %v3777_v16 = vld [vmem:[#allocation5 + $0x818] ss:$24 sps:$4 sm:$0xff]   ;;  %v3788_v20 = vld [vmem:[#allocation5 + $0x48c] ss:$24 sps:$4 sm:$0xff]  }
  0xd2   :  { %2128 = vmatprep.subr.bf16.mxu1 %v3701_v19  ;;  %v3785_v19 = vld [vmem:[#allocation5 + $0x7ec] ss:$24 sps:$4 sm:$0xff]  }
  0xd4   :  { %2142 = vmatpush1.bf16.msra.mxu0 %v3702_v22  ;;  %v3786_v22 = vld [vmem:[#allocation5 + $0x488] ss:$24 sps:$4 sm:$0xff]  }
  0xd5   :  { %2129 = vmatpush2.bf16.msra.mxu1 %v3699_v21  ;;  %2143 = vmatprep.subr.bf16.mxu0 %v3710_v24  ;;  %v3783_v21 = vld [vmem:[#allocation5 + $0x7e8] ss:$24 sps:$4 sm:$0xff]   ;;  %v3794_v24 = vld [vmem:[#allocation5 + $0x164] ss:$24 sps:$4 sm:$0xff]  }
  0xd6   :  { %2180 = vmatprep.subr.bf16.mxu1 %v3707_v23  ;;  %v3791_v23 = vld [vmem:[#allocation5 + $0x7bc] ss:$24 sps:$4 sm:$0xff]  }
  0xd8   :  { %2131 = vmatmul.mubr.bf16.vlgmr.msra.gmra.mxu1 %v4327_v6  ;;  %2144 = vmatpush1.bf16.msra.mxu0 %v3708_v26  ;;  %v3792_v26 = vld [vmem:[#allocation5 + $0x160] ss:$24 sps:$4 sm:$0xff]  }
  0xd9   :  { %2181 = vmatpush1.bf16.msra.mxu1 %v3705_v25  ;;  %2145 = vmatprep.subr.bf16.mxu0 %v3716_v28  ;;  %v3789_v25 = vld [vmem:[#allocation5 + $0x7b8] ss:$24 sps:$4 sm:$0xff]   ;;  %v3800_v28 = vld [vmem:[#allocation5 + $0x134] ss:$24 sps:$4 sm:$0xff]  }
  0xda   :  { %2182 = vmatprep.subr.bf16.mxu1 %v3713_v27  ;;  %2212 = vmatprep.mubr.bf16.mxu1 %v4343_v33  ;;  %v3797_v27 = vld [vmem:[#allocation5 + $0x78c] ss:$24 sps:$4 sm:$0xff]  }
  0xdc   :  { %2146 = vmatpush1.bf16.msra.mxu0 %v3714_v30  ;;  %v3798_v30 = vld [vmem:[#allocation5 + $0x130] ss:$24 sps:$4 sm:$0xff]  }
  0xdd   :  { %2183 = vmatpush1.bf16.msra.mxu1 %v3711_v29  ;;  %2147 = vmatprep.subr.bf16.mxu0 %v3722_v32  ;;  %v3795_v29 = vld [vmem:[#allocation5 + $0x788] ss:$24 sps:$4 sm:$0xff]   ;;  %v3806_v32 = vld [vmem:[#allocation5 + $0x90c] ss:$24 sps:$4 sm:$0xff]  }
  0xde   :  { %2184 = vmatprep.subr.bf16.mxu1 %v3719_v31  ;;  %v3803_v31 = vld [vmem:[#allocation5 + $0x104] ss:$24 sps:$4 sm:$0xff]  }
  0xe0   :  { %2148 = vmatpush1.bf16.msra.mxu0 %v3720_v35  ;;  %v3804_v35 = vld [vmem:[#allocation5 + $0x908] ss:$24 sps:$4 sm:$0xff]  }
  0xe1   :  { %2185 = vmatpush1.bf16.msra.mxu1 %v3717_v34  ;;  %2149 = vmatprep.subr.bf16.mxu0 %v3728_v37  ;;  %v3801_v34 = vld [vmem:[#allocation5 + $0x100] ss:$24 sps:$4 sm:$0xff]   ;;  %v3812_v37 = vld [vmem:[#allocation5 + $0x464] ss:$24 sps:$4 sm:$0xff]  }
  0xe2   :  { %2186 = vmatprep.subr.bf16.mxu1 %v3725_v36  ;;  %v3809_v36 = vld [vmem:[#allocation5 + $0xd4] ss:$24 sps:$4 sm:$0xff]  }
  0xe4   :  { %2150 = vmatpush1.bf16.msra.mxu0 %v3726_v39  ;;  %v3815_v39 = vld [vmem:[#allocation5 + $0xa4] ss:$24 sps:$4 sm:$0xff]  }
  0xe5   :  { %2187 = vmatpush1.bf16.msra.mxu1 %v3723_v38  ;;  %2151 = vmatprep.subr.bf16.mxu0 %v3734_v41  ;;  %v3807_v38 = vld [vmem:[#allocation5 + $0xd0] ss:$24 sps:$4 sm:$0xff]   ;;  %v3818_v41 = vld [vmem:[#allocation5 + $0x434] ss:$24 sps:$4 sm:$0xff]  }
  0xe6   :  { %2188 = vmatprep.subr.bf16.mxu1 %v3731_v40  ;;  %v3810_v40 = vld [vmem:[#allocation5 + $0x460] ss:$24 sps:$4 sm:$0xff]  }
  0xe8   :  { %2152 = vmatpush1.bf16.msra.mxu0 %v3732_v43  ;;  %v3816_v43 = vld [vmem:[#allocation5 + $0x430] ss:$24 sps:$4 sm:$0xff]  }
  0xe9   :  { %2189 = vmatpush1.bf16.msra.mxu1 %v3729_v42  ;;  %2153 = vmatprep.subr.bf16.mxu0 %v3740_v45  ;;  %v3821_v42 = vld [vmem:[#allocation5 + $0x74] ss:$24 sps:$4 sm:$0xff]   ;;  %v3824_v45 = vld [vmem:[#allocation5 + $0x404] ss:$24 sps:$4 sm:$0xff]  }
  0xea   :  { %2190 = vmatprep.subr.bf16.mxu1 %v3737_v44  ;;  %v3819_v44 = vld [vmem:[#allocation5 + $0x70] ss:$24 sps:$4 sm:$0xff]  }
  0xec   :  { %2154 = vmatpush1.bf16.msra.mxu0 %v3738_v48  ;;  %v3822_v48 = vld [vmem:[#allocation5 + $0x400] ss:$24 sps:$4 sm:$0xff]  }
  0xed   :  { %2191 = vmatpush1.bf16.msra.mxu1 %v3735_v46  ;;  %2155 = vmatprep.subr.bf16.mxu0 %v3746_v50  ;;  %v3827_v46 = vld [vmem:[#allocation5 + $0x44] ss:$24 sps:$4 sm:$0xff]   ;;  %v3830_v50 = vld [vmem:[#allocation5 + $0x3d4] ss:$24 sps:$4 sm:$0xff]  }
  0xee   :  { %2192 = vmatprep.subr.bf16.mxu1 %v3743_v49  ;;  %v3825_v49 = vld [vmem:[#allocation5 + $0x40] ss:$24 sps:$4 sm:$0xff]  }
  0xf0   :  { %2156 = vmatpush2.bf16.msra.mxu0 %v3744_v53  ;;  %v3828_v53 = vld [vmem:[#allocation5 + $0x3d0] ss:$24 sps:$4 sm:$0xff]  }
  0xf1   :  { %2193 = vmatpush1.bf16.msra.mxu1 %v3741_v52  ;;  %2157 = vmatprep.subr.bf16.mxu0 %v3752_v55  ;;  %v3833_v52 = vld [vmem:[#allocation5 + $0x14] ss:$24 sps:$4 sm:$0xff]   ;;  %v3839_v55 = vld [vmem:[#allocation5 + $0x2e4] ss:$24 sps:$4 sm:$0xff]  }
  0xf2   :  { %2194 = vmatprep.subr.bf16.mxu1 %v3749_v54  ;;  %v3831_v54 = vld [vmem:[#allocation5 + $0x10] ss:$24 sps:$4 sm:$0xff]  }
  0xf4   :  { %2158 = vmatpush2.bf16.msra.mxu0 %v3750_v57  ;;  %v3837_v57 = vld [vmem:[#allocation5 + $0x2e0] ss:$24 sps:$4 sm:$0xff]  }
  0xf5   :  { %2195 = vmatpush1.bf16.msra.mxu1 %v3747_v56  ;;  %2159 = vmatprep.subr.bf16.mxu0 %v3758_v59  ;;  %v3834_v56 = vld [vmem:[#allocation5 + $0x3a0] ss:$24 sps:$4 sm:$0xff]   ;;  %v3845_v59 = vld [vmem:[#allocation5 + $0x2b4] ss:$24 sps:$4 sm:$0xff]  }
  0xf6   :  { %2196 = vmatprep.subr.bf16.mxu1 %v3755_v58  ;;  %v3842_v58 = vld [vmem:[#allocation5 + $0x374] ss:$24 sps:$4 sm:$0xff]  }
  0xf8   :  { %2160 = vmatpush2.bf16.msra.mxu0 %v3756_v61  ;;  %v3848_v61 = vld [vmem:[#allocation5 + $0x344] ss:$24 sps:$4 sm:$0xff]  }
  0xf9   :  { %2197 = vmatpush2.bf16.msra.mxu1 %v3753_v60  ;;  %2161 = vmatprep.subr.bf16.mxu0 %v3764_v63  ;;  %v3843_v60 = vld [vmem:[#allocation5 + $0x2b0] ss:$24 sps:$4 sm:$0xff]   ;;  %v3846_v63 = vld [vmem:[#allocation5 + $0x340] ss:$24 sps:$4 sm:$0xff]  }
  0xfa   :  { %2198 = vmatprep.subr.bf16.mxu1 %v3761_v62  ;;  %v3851_v62 = vld [vmem:[#allocation5 + $0x284] ss:$24 sps:$4 sm:$0xff]  }
  0xfc   :  { %2162 = vmatpush2.bf16.msra.mxu0 %v3762_v1  ;;  %v3854_v1 = vld [vmem:[#allocation5 + $0x314] ss:$24 sps:$4 sm:$0xff]  }
  0xfd   :  { %2199 = vmatpush2.bf16.msra.mxu1 %v3759_v0  ;;  %2163 = vmatprep.subr.bf16.mxu0 %v3770_v3  ;;  %v3849_v0 = vld [vmem:[#allocation5 + $0x280] ss:$24 sps:$4 sm:$0xff]   ;;  %v3852_v3 = vld [vmem:[#allocation5 + $0x310] ss:$24 sps:$4 sm:$0xff]  }
  0xfe   :  { %2200 = vmatprep.subr.bf16.mxu1 %v3767_v2  ;;  %v3857_v2 = vld [vmem:[#allocation5 + $0x254] ss:$24 sps:$4 sm:$0xff]  }
 0x100   :  { %2164 = vmatpush2.bf16.msra.mxu0 %v3768_v5  ;;  %v3860_v5 = vld [vmem:[#allocation5 + $0x5e4] ss:$24 sps:$4 sm:$0xff]  }
 0x101   :  { %2201 = vmatpush2.bf16.msra.mxu1 %v3765_v4  ;;  %2165 = vmatprep.subr.bf16.mxu0 %v3776_v9  ;;  %v3855_v4 = vld [vmem:[#allocation5 + $0x250] ss:$24 sps:$4 sm:$0xff]   ;;  %v3858_v9 = vld [vmem:[#allocation5 + $0x5e0] ss:$24 sps:$4 sm:$0xff]  }
 0x102   :  { %2202 = vmatprep.subr.bf16.mxu1 %v3773_v8  ;;  %v3863_v8 = vld [vmem:[#allocation5 + $0x224] ss:$24 sps:$4 sm:$0xff]  }
 0x104   :  { %2166 = vmatpush2.bf16.msra.mxu0 %v3774_v11  ;;  %v3866_v11 = vld [vmem:[#allocation5 + $0x5b4] ss:$24 sps:$4 sm:$0xff]  }
 0x105   :  { %2203 = vmatpush2.bf16.msra.mxu1 %v3771_v10  ;;  %2167 = vmatprep.subr.bf16.mxu0 %v3782_v14  ;;  %v3861_v10 = vld [vmem:[#allocation5 + $0x220] ss:$24 sps:$4 sm:$0xff]   ;;  %v3864_v14 = vld [vmem:[#allocation5 + $0x5b0] ss:$24 sps:$4 sm:$0xff]  }
 0x106   :  { %2204 = vmatprep.subr.bf16.mxu1 %v3779_v12  ;;  %v3869_v12 = vld [vmem:[#allocation5 + $0x1f4] ss:$24 sps:$4 sm:$0xff]  }
 0x108   :  { %2168 = vmatpush2.bf16.msra.mxu0 %v3780_v18  ;;  %v3872_v18 = vld [vmem:[#allocation5 + $0x584] ss:$24 sps:$4 sm:$0xff]  }
 0x109   :  { %2205 = vmatpush2.bf16.msra.mxu1 %v3777_v16  ;;  %2169 = vmatprep.subr.bf16.mxu0 %v3788_v20  ;;  %v3867_v16 = vld [vmem:[#allocation5 + $0x1f0] ss:$24 sps:$4 sm:$0xff]   ;;  %v3870_v20 = vld [vmem:[#allocation5 + $0x580] ss:$24 sps:$4 sm:$0xff]  }
 0x10a   :  { %2206 = vmatprep.subr.bf16.mxu1 %v3785_v19  ;;  %v3875_v19 = vld [vmem:[#allocation5 + $0x1c4] ss:$24 sps:$4 sm:$0xff]  }
 0x10c   :  { %2170 = vmatpush2.bf16.msra.mxu0 %v3786_v22  ;;  %v3878_v22 = vld [vmem:[#allocation5 + $0x554] ss:$24 sps:$4 sm:$0xff]  }
 0x10d   :  { %2207 = vmatpush2.bf16.msra.mxu1 %v3783_v21  ;;  %2262 = vmatprep.subr.bf16.mxu0 %v3794_v24  ;;  %v3873_v21 = vld [vmem:[#allocation5 + $0x1c0] ss:$24 sps:$4 sm:$0xff]   ;;  %v3876_v24 = vld [vmem:[#allocation5 + $0x550] ss:$24 sps:$4 sm:$0xff]  }
 0x10e   :  { %2208 = vmatprep.subr.bf16.mxu1 %v3791_v23  ;;  %v3881_v23 = vld [vmem:[#allocation5 + $0x194] ss:$24 sps:$4 sm:$0xff]  }
 0x10f   :  { %2172 = vmatmul.mubr.bf16.vlgmr.msra.gmra.mxu0 %v4329_v7 }
 0x110   :  { %2263 = vmatpush1.bf16.msra.mxu0 %v3792_v26  ;;  %2294 = vmatprep.mubr.bf16.mxu0 %v4321_v47  ;;  %v3813_v47 = vld [vmem:[#allocation5 + $0xa0] ss:$24 sps:$4 sm:$0xff]   ;;  %v3884_v26 = vld [vmem:[#allocation5 + $0x524] ss:$24 sps:$4 sm:$0xff]  }
 0x111   :  { %2209 = vmatpush2.bf16.msra.mxu1 %v3789_v25  ;;  %2264 = vmatprep.subr.bf16.mxu0 %v3800_v28  ;;  %v3879_v25 = vld [vmem:[#allocation5 + $0x190] ss:$24 sps:$4 sm:$0xff]   ;;  %v3882_v28 = vld [vmem:[#allocation5 + $0x520] ss:$24 sps:$4 sm:$0xff]  }
 0x112   :  { %2210 = vmatprep.subr.bf16.mxu1 %v3797_v27  ;;  %v3887_v27 = vld [vmem:[#allocation5 + $0x764] ss:$24 sps:$4 sm:$0xff]  }
 0x114   :  { %2265 = vmatpush1.bf16.msra.mxu0 %v3798_v30  ;;  %v3890_v30 = vld [vmem:[#allocation5 + $0x4f4] ss:$24 sps:$4 sm:$0xff]  }
 0x115   :  { %2211 = vmatpush2.bf16.msra.mxu1 %v3795_v29  ;;  %2266 = vmatprep.subr.bf16.mxu0 %v3803_v31  ;;  %v3885_v29 = vld [vmem:[#allocation5 + $0x760] ss:$24 sps:$4 sm:$0xff]   ;;  %v3893_v31 = vld [vmem:[#allocation5 + $0x734] ss:$24 sps:$4 sm:$0xff]  }
 0x116   :  { %2235 = vmatprep.subr.bf16.mxu1 %v3806_v32 }
 0x118   :  { %2213 = vmatmul.mubr.bf16.vlgmr.msra.gmra.mxu1 %v4348_v15  ;;  %2267 = vmatpush1.bf16.msra.mxu0 %v3801_v34 }
 0x119   :  { %2236 = vmatpush1.bf16.msra.mxu1 %v3804_v35  ;;  %2268 = vmatprep.subr.bf16.mxu0 %v3809_v36  ;;  %v3888_v35 = vld [vmem:[#allocation5 + $0x4f0] ss:$24 sps:$4 sm:$0xff]  }
 0x11a   :  { %2253 = vmatprep.mubr.bf16.mxu1 %v4242_v13  ;;  %2303 = vmatprep.subr.bf16.mxu1 %v3812_v37  ;;  %v3891_v36 = vld [vmem:[#allocation5 + $0x730] ss:$24 sps:$4 sm:$0xff]  }
 0x11c   :  { %2269 = vmatpush1.bf16.msra.mxu0 %v3807_v38 }
 0x11d   :  { %2270 = vmatprep.subr.bf16.mxu0 %v3815_v39  ;;  %v3896_v39 = vld [vmem:[#allocation5 + $0x4c4] ss:$24 sps:$4 sm:$0xff]  }
 0x120   :  { %3364 = vmatmul.mubr.msk.bf16.vlgmr.msra.gmra.mxu1 %vm1930_vm0, %v4334_v17  ;;  %2271 = vmatpush1.bf16.msra.mxu0 %v3813_v47  ;;  %v3836_v17 = vld [vmem:[#allocation5 + $0x3a4] ss:$24 sps:$4 sm:$0xff]  }
 0x121   :  { %2304 = vmatpush1.bf16.msra.mxu1 %v3810_v40  ;;  %2272 = vmatprep.subr.bf16.mxu0 %v3821_v42  ;;  %v3899_v40 = vld [vmem:[#allocation5 + $0x704] ss:$24 sps:$4 sm:$0xff]   ;;  %v3897_v42 = vld [vmem:[#allocation5 + $0x700] ss:$24 sps:$4 sm:$0xff]  }
 0x122   :  { %2305 = vmatprep.subr.bf16.mxu1 %v3818_v41  ;;  %2335 = vmatprep.mubr.bf16.mxu1 %v4323_v51  ;;  %v3840_v51 = vld [vmem:[#allocation5 + $0x370] ss:$24 sps:$4 sm:$0xff]  }
 0x124   :  { %2273 = vmatpush1.bf16.msra.mxu0 %v3819_v44  ;;  %v3902_v44 = vld [vmem:[#allocation5 + $0x494] ss:$24 sps:$4 sm:$0xff]  }
 0x125   :  { %2306 = vmatpush1.bf16.msra.mxu1 %v3816_v43  ;;  %2274 = vmatprep.subr.bf16.mxu0 %v3827_v46 }
 0x126   :  { %2307 = vmatprep.subr.bf16.mxu1 %v3824_v45  ;;  %v3905_v45 = vld [vmem:[#allocation5 + $0x6d4] ss:$24 sps:$4 sm:$0xff]  }
 0x128   :  { %2275 = vmatpush1.bf16.msra.mxu0 %v3825_v49  ;;  %v3900_v49 = vld [vmem:[#allocation5 + $0x490] ss:$24 sps:$4 sm:$0xff]  }
 0x129   :  { %2308 = vmatpush1.bf16.msra.mxu1 %v3822_v48  ;;  %2276 = vmatprep.subr.bf16.mxu0 %v3833_v52  ;;  %v3929_v52 = vld [vmem:[#allocation5 + $0x914] ss:$24 sps:$4 sm:$0xff]  }
 0x12a   :  { %2309 = vmatprep.subr.bf16.mxu1 %v3830_v50  ;;  %v3903_v50 = vld [vmem:[#allocation5 + $0x6d0] ss:$24 sps:$4 sm:$0xff]  }
 0x12c   :  { %2277 = vmatpush1.bf16.msra.mxu0 %v3831_v54 }
 0x12d   :  { %2310 = vmatpush1.bf16.msra.mxu1 %v3828_v53  ;;  %2278 = vmatprep.subr.bf16.mxu0 %v3839_v55  ;;  %v3927_v55 = vld [vmem:[#allocation5 + $0x910] ss:$24 sps:$4 sm:$0xff]  }
 0x12e   :  { %2311 = vmatprep.subr.bf16.mxu1 %v3836_v17  ;;  %v3906_v17 = vld [vmem:[#allocation5 + $0x6a0] ss:$24 sps:$4 sm:$0xff]  }
 0x130   :  { %2279 = vmatpush2.bf16.msra.mxu0 %v3837_v57 }
 0x131   :  { %2312 = vmatpush1.bf16.msra.mxu1 %v3834_v56  ;;  %2280 = vmatprep.subr.bf16.mxu0 %v3845_v59  ;;  %v3911_v56 = vld [vmem:[#allocation5 + $0x674] ss:$24 sps:$4 sm:$0xff]   ;;  %v3909_v59 = vld [vmem:[#allocation5 + $0x670] ss:$24 sps:$4 sm:$0xff]  }
 0x132   :  { %2313 = vmatprep.subr.bf16.mxu1 %v3842_v58  ;;  %v3933_v58 = vld [vmem:[#allocation10 + $0x78] sm:$0xff]  }
 0x134   :  { %2281 = vmatpush2.bf16.msra.mxu0 %v3843_v60  ;;  %v3912_v60 = vld [vmem:[#allocation5 + $0x640] ss:$24 sps:$4 sm:$0xff]  }
 0x135   :  { %2314 = vmatpush1.bf16.msra.mxu1 %v3840_v51  ;;  %2282 = vmatprep.subr.bf16.mxu0 %v3851_v62  ;;  %v3914_v51 = vld [vmem:[#allocation5 + $0x644] ss:$24 sps:$4 sm:$0xff]   ;;  %v3917_v62 = vld [vmem:[#allocation5 + $0x614] ss:$24 sps:$4 sm:$0xff]  }
 0x136   :  { %2315 = vmatprep.subr.bf16.mxu1 %v3848_v61  ;;  %v3934_v61 = vld [vmem:[#allocation10 + $0x38] sm:$0xff]  }
 0x138   :  { %2283 = vmatpush2.bf16.msra.mxu0 %v3849_v0  ;;  %v3997_v0 = vld [vmem:[#allocation2 + $0x18] ss:$0 sps:$4 sm:$0xff]  }
 0x139   :  { %2316 = vmatpush1.bf16.msra.mxu1 %v3846_v63  ;;  %2284 = vmatprep.subr.bf16.mxu0 %v3857_v2  ;;  %v3938_v63 = vld [vmem:[#allocation10 + $0x70] sm:$0xff]  }
 0x13a   :  { %2317 = vmatprep.subr.bf16.mxu1 %v3854_v1  ;;  %v3915_v1 = vld [vmem:[#allocation5 + $0x610] ss:$24 sps:$4 sm:$0xff]   ;;  %v3920_v2 = vld [vmem:[#allocation5 + $0x8e4] ss:$24 sps:$4 sm:$0xff]  }
 0x13c   :  { %2285 = vmatpush2.bf16.msra.mxu0 %v3855_v4  ;;  %v3944_v4 = vld [vmem:[#allocation10 + $0x28] sm:$0xff]  }
 0x13d   :  { %2318 = vmatpush1.bf16.msra.mxu1 %v3852_v3  ;;  %2286 = vmatprep.subr.bf16.mxu0 %v3863_v8  ;;  %v3943_v3 = vld [vmem:[#allocation10 + $0x68] sm:$0xff]   ;;  %v3948_v8 = vld [vmem:[#allocation10 + $0x60] sm:$0xff]  }
 0x13e   :  { %2319 = vmatprep.subr.bf16.mxu1 %v3860_v5  ;;  %v3923_v5 = vld [vmem:[#allocation5 + $0x8b4] ss:$24 sps:$4 sm:$0xff]  }
 0x140   :  { %2287 = vmatpush2.bf16.msra.mxu0 %v3861_v10  ;;  %v3949_v10 = vld [vmem:[#allocation10 + $0x20] sm:$0xff]  }
 0x141   :  { %2320 = vmatpush2.bf16.msra.mxu1 %v3858_v9  ;;  %2288 = vmatprep.subr.bf16.mxu0 %v3869_v12  ;;  %v3921_v9 = vld [vmem:[#allocation5 + $0x8b0] ss:$24 sps:$4 sm:$0xff]   ;;  %v3953_v12 = vld [vmem:[#allocation10 + $0x58] sm:$0xff]  }
 0x142   :  { %2321 = vmatprep.subr.bf16.mxu1 %v3866_v11  ;;  %v3926_v11 = vld [vmem:[#allocation5 + $0x884] ss:$24 sps:$4 sm:$0xff]  }
 0x144   :  { %2289 = vmatpush2.bf16.msra.mxu0 %v3867_v16  ;;  %v3954_v16 = vld [vmem:[#allocation10 + $0x18] sm:$0xff]  }
 0x145   :  { %2322 = vmatpush2.bf16.msra.mxu1 %v3864_v14  ;;  %2290 = vmatprep.subr.bf16.mxu0 %v3875_v19  ;;  %v3924_v14 = vld [vmem:[#allocation5 + $0x880] ss:$24 sps:$4 sm:$0xff]  }
 0x146   :  { %2323 = vmatprep.subr.bf16.mxu1 %v3872_v18  ;;  %v3932_v18 = vld [vmem:[#allocation5 + $0x854] ss:$24 sps:$4 sm:$0xff]  }
 0x147   :  { %v3955_v19 = vld [vmem:[#allocation10 + $0x50] sm:$0xff]  }
 0x148   :  { %2291 = vmatpush2.bf16.msra.mxu0 %v3873_v21  ;;  %v3956_v21 = vld [vmem:[#allocation10 + $0x10] sm:$0xff]  }
 0x149   :  { %2324 = vmatpush2.bf16.msra.mxu1 %v3870_v20  ;;  %2292 = vmatprep.subr.bf16.mxu0 %v3881_v23  ;;  %v3930_v20 = vld [vmem:[#allocation5 + $0x850] ss:$24 sps:$4 sm:$0xff]  }
 0x14a   :  { %2325 = vmatprep.subr.bf16.mxu1 %v3878_v22  ;;  %v3937_v22 = vld [vmem:[#allocation5 + $0x824] ss:$24 sps:$4 sm:$0xff]   ;;  %v3957_v23 = vld [vmem:[#allocation10 + $0x48] sm:$0xff]  }
 0x14c   :  { %2293 = vmatpush2.bf16.msra.mxu0 %v3879_v25  ;;  %v3935_v25 = vld [vmem:[#allocation5 + $0x820] ss:$24 sps:$4 sm:$0xff]  }
 0x14d   :  { %2326 = vmatpush2.bf16.msra.mxu1 %v3876_v24  ;;  %2344 = vmatprep.subr.bf16.mxu0 %v3887_v27  ;;  %v406_v24 = vlaneseq  ;;  %v3942_v27 = vld [vmem:[#allocation5 + $0x7f4] ss:$24 sps:$4 sm:$0xff]  }
 0x14e   :  { %2327 = vmatprep.subr.bf16.mxu1 %v3884_v26  ;;  %v3958_v26 = vld [vmem:[#allocation10 + $0x8] sm:$0xff]  }
 0x14f   :  { %v4361_v32 = vpop.f32.mrf.mxu0  ;;  %2295 = vmatmul.mubr.bf16.vlgmr.msra.gmra.mxu0 %v4327_v6  ;;  %v3894_v6 = vld [vmem:[#allocation5 + $0x4c0] ss:$24 sps:$4 sm:$0xff]  }
 0x150   :  { %v4364_v34 = vpop.f32.mrf.mxu1  ;;  %2345 = vmatpush1.bf16.msra.mxu0 %v3885_v29  ;;  %2376 = vmatprep.mubr.bf16.mxu0 %v4343_v33  ;;  %v3908_v33 = vld [vmem:[#allocation5 + $0x6a4] ss:$24 sps:$4 sm:$0xff]   ;;  %v4378_v29 = vshrl.u32 %v406_v24, 7  ;;  %v3974_v24 = vld [vmem:[#allocation10 + $0x88] sm:$0xff]  }
 0x151   :  { %2328 = vmatpush2.bf16.msra.mxu1 %v3882_v28  ;;  %v4366_v37 = vpop.f32.mrf.mxu0  ;;  %2346 = vmatprep.subr.bf16.mxu0 %v3893_v31  ;;  %v3959_v28 = vld [vmem:[#allocation10 + $0x40] sm:$0xff]  }
 0x152   :  { %2329 = vmatprep.subr.bf16.mxu1 %v3890_v30  ;;  %v4368_v38 = vpop.f32.mrf.mxu1  ;;  %v3940_v30 = vld [vmem:[#allocation5 + $0x7f0] ss:$24 sps:$4 sm:$0xff]  }
 0x153   :  { %v1972_v47 = vpop.f32.mrf.mxu0  ;;  %v3960_v31 = vld [vmem:[#allocation10] sm:$0xff]  }
 0x154   :  { %v2013_v41 = vpop.f32.mrf.mxu1  ;;  %2347 = vmatpush1.bf16.msra.mxu0 %v3891_v36  ;;  %v3961_v36 = vld [vmem:[#allocation10 + $0xf8] sm:$0xff]   ;;  %v412_v47 = vsub.s32 1, %v4378_v29 }
 0x155   :  { %2330 = vmatpush2.bf16.msra.mxu1 %v3888_v35  ;;  %v1973_v43 = vpop.f32.mrf.mxu0  ;;  %2348 = vmatprep.subr.bf16.mxu0 %v3899_v40  ;;  %v3947_v35 = vld [vmem:[#allocation5 + $0x7c4] ss:$24 sps:$4 sm:$0xff]   ;;  %v4381_v40 = vld [vmem:[#allocation7] sm:$0x3f]  ;;  %v3945_v41 = vld [vmem:[#allocation5 + $0x7c0] ss:$24 sps:$4 sm:$0xff]  }
 0x156   :  { %2331 = vmatprep.subr.bf16.mxu1 %v3896_v39  ;;  %v2014_v46 = vpop.f32.mrf.mxu1  ;;  %v408_v39 = vsub.s32 0, %v4378_v29  ;;  %v413_v43 = vrot.slane %v4381_v40, %v412_v47 }
 0x158   :  { %v4371_v48 = vpop.f32.mrf.mxu1  ;;  %2349 = vmatpush1.bf16.msra.mxu0 %v3897_v42  ;;  %v409_v42 = vrot.slane %v4381_v40, %v408_v39  ;;  %v1971_v46 = vadd.f32 %v4366_v37, %v413_v43  ;;  %v420_v39 = vsub.s32 3, %v4378_v29 }
 0x159   :  { %2332 = vmatpush2.bf16.msra.mxu1 %v3894_v6  ;;  %2350 = vmatprep.subr.bf16.mxu0 %v3905_v45  ;;  %v3952_v6 = vld [vmem:[#allocation5 + $0x794] ss:$24 sps:$4 sm:$0xff]  }
 0x15a   :  { %2333 = vmatprep.subr.bf16.mxu1 %v3902_v44  ;;  %v4373_v53 = vpop.f32.mrf.mxu1  ;;  %v3950_v44 = vld [vmem:[#allocation5 + $0x790] ss:$24 sps:$4 sm:$0xff]   ;;  %v1969_v45 = vadd.f32 %v4361_v32, %v409_v42 }
 0x15b   :  { %v3990_v42 = vld [vmem:[#allocation10 + $0x108] sm:$0xff]  }
 0x15c   :  { %v2095_v54 = vpop.f32.mrf.mxu1  ;;  %2351 = vmatpush1.bf16.msra.mxu0 %v3903_v50 }
 0x15d   :  { %2334 = vmatpush2.bf16.msra.mxu1 %v3900_v49  ;;  %2352 = vmatprep.subr.bf16.mxu0 %v3908_v33  ;;  %v2010_v49 = vadd.f32 %v4364_v34, %v1969_v45  ;;  %v2012_v33 = vadd.f32 %v4368_v38, %v1971_v46  ;;  %v2426_v54 = vld [vmem:[#allocation8] sm:$0xff]  ;;  %v3991_v45 = vld [vmem:[#allocation10 + $0x140] sm:$0xff]  }
 0x15e   :  { %2399 = vmatprep.subr.bf16.mxu1 %v3929_v52  ;;  %v2096_v57 = vpop.f32.mrf.mxu1  ;;  %v3992_v46 = vld [vmem:[#allocation10 + $0x100] sm:$0xff]  }
 0x15f   :  { %v2427_v57 = vld [vmem:[#allocation8 + $0x8] sm:$0xff] }
 0x160   :  { %2336 = vmatmul.mubr.bf16.vlgmr.msra.gmra.mxu1 %v4329_v7  ;;  %2353 = vmatpush1.bf16.msra.mxu0 %v3906_v17  ;;  %v3939_v7 = vld [vmem:[#allocation10 + $0x30] sm:$0xff]  }
 0x161   :  { %2400 = vmatpush1.bf16.msra.mxu1 %v3927_v55  ;;  %2354 = vmatprep.subr.bf16.mxu0 %v3911_v56 }
 0x162   :  { %2417 = vmatprep.mubr.bf16.mxu1 %v4242_v13  ;;  %3415 = vmatprep.subr.bf16.mxu1 %v3933_v58  ;;  %v3918_v13 = vld [vmem:[#allocation5 + $0x8e0] ss:$24 sps:$4 sm:$0xff]  }
 0x164   :  { %2355 = vmatpush1.bf16.msra.mxu0 %v3909_v59 }
 0x165   :  { %2356 = vmatprep.subr.bf16.mxu0 %v3914_v51 }
 0x168   :  { %3365 = vmatmul.mubr.msk.bf16.vlgmr.msra.gmra.mxu1 %vm1930_vm0, %v3997_v0  ;;  %2357 = vmatpush1.bf16.msra.mxu0 %v3912_v60  ;;  %v3963_v0 = vld [vmem:[#allocation10 + $0xf0] sm:$0xff]  }
 0x169   :  { %3416 = vmatpush3.bf16.msra.mxu1 %v3934_v61  ;;  %2358 = vmatprep.subr.bf16.mxu0 %v3917_v62  ;;  %v3962_v61 = vld [vmem:[#allocation10 + $0xb8] sm:$0xff]  }
 0x16a   :  { %3417 = vmatprep.subr.bf16.mxu1 %v3938_v63 }
 0x16c   :  { %2359 = vmatpush1.bf16.msra.mxu0 %v3915_v1  ;;  %v3964_v1 = vld [vmem:[#allocation10 + $0xb0] sm:$0xff]  }
 0x16d   :  { %3418 = vmatpush3.bf16.msra.mxu1 %v3939_v7  ;;  %2360 = vmatprep.subr.bf16.mxu0 %v3920_v2  ;;  %v3965_v7 = vld [vmem:[#allocation10 + $0xe8] sm:$0xff]  }
 0x16e   :  { %3419 = vmatprep.subr.bf16.mxu1 %v3943_v3  ;;  %v3966_v2 = vld [vmem:[#allocation10 + $0xa8] sm:$0xff]   ;;  %v3977_v3 = vld [vmem:[#allocation10 + $0x178] sm:$0xff]  }
 0x170   :  { %2361 = vmatpush2.bf16.msra.mxu0 %v3918_v13  ;;  %v3978_v13 = vld [vmem:[#allocation10 + $0x138] sm:$0xff]  }
 0x171   :  { %3420 = vmatpush3.bf16.msra.mxu1 %v3944_v4  ;;  %2362 = vmatprep.subr.bf16.mxu0 %v3923_v5  ;;  %v3979_v4 = vld [vmem:[#allocation10 + $0x170] sm:$0xff]   ;;  %v3967_v5 = vld [vmem:[#allocation10 + $0xe0] sm:$0xff]  }
 0x172   :  { %3421 = vmatprep.subr.bf16.mxu1 %v3948_v8  ;;  %v3980_v8 = vld [vmem:[#allocation10 + $0x130] sm:$0xff]  }
 0x174   :  { %2363 = vmatpush2.bf16.msra.mxu0 %v3921_v9  ;;  %v3968_v9 = vld [vmem:[#allocation10 + $0xa0] sm:$0xff]  }
 0x175   :  { %3422 = vmatpush3.bf16.msra.mxu1 %v3949_v10  ;;  %2364 = vmatprep.subr.bf16.mxu0 %v3926_v11  ;;  %v3981_v10 = vld [vmem:[#allocation10 + $0x168] sm:$0xff]   ;;  %v3969_v11 = vld [vmem:[#allocation10 + $0xd8] sm:$0xff]  }
 0x176   :  { %3423 = vmatprep.subr.bf16.mxu1 %v3953_v12  ;;  %v3982_v12 = vld [vmem:[#allocation10 + $0x128] sm:$0xff]  }
 0x178   :  { %2365 = vmatpush2.bf16.msra.mxu0 %v3924_v14  ;;  %v3970_v14 = vld [vmem:[#allocation10 + $0x98] sm:$0xff]  }
 0x179   :  { %3424 = vmatpush3.bf16.msra.mxu1 %v3954_v16  ;;  %2366 = vmatprep.subr.bf16.mxu0 %v3932_v18  ;;  %v3983_v16 = vld [vmem:[#allocation10 + $0x160] sm:$0xff]   ;;  %v3971_v18 = vld [vmem:[#allocation10 + $0xd0] sm:$0xff]  }
 0x17a   :  { %3425 = vmatprep.subr.bf16.mxu1 %v3955_v19  ;;  %v3984_v19 = vld [vmem:[#allocation10 + $0x120] sm:$0xff]  }
 0x17c   :  { %2367 = vmatpush2.bf16.msra.mxu0 %v3930_v20  ;;  %v3972_v20 = vld [vmem:[#allocation10 + $0x90] sm:$0xff]  }
 0x17d   :  { %3426 = vmatpush3.bf16.msra.mxu1 %v3956_v21  ;;  %2368 = vmatprep.subr.bf16.mxu0 %v3937_v22  ;;  %v3985_v21 = vld [vmem:[#allocation10 + $0x158] sm:$0xff]   ;;  %v3973_v22 = vld [vmem:[#allocation10 + $0xc8] sm:$0xff]  }
 0x17e   :  { %3427 = vmatprep.subr.bf16.mxu1 %v3957_v23  ;;  %v3986_v23 = vld [vmem:[#allocation10 + $0x118] sm:$0xff]  }
 0x180   :  { %2369 = vmatpush2.bf16.msra.mxu0 %v3935_v25  ;;  %v3975_v25 = vld [vmem:[#allocation10 + $0xc0] sm:$0xff]  }
 0x181   :  { %3428 = vmatpush3.bf16.msra.mxu1 %v3958_v26  ;;  %2370 = vmatprep.subr.bf16.mxu0 %v3942_v27  ;;  %v3976_v26 = vld [vmem:[#allocation10 + $0x80] sm:$0xff]  }
 0x182   :  { %3429 = vmatprep.subr.bf16.mxu1 %v3959_v28 }
 0x184   :  { %2371 = vmatpush2.bf16.msra.mxu0 %v3940_v30  ;;  %v3987_v30 = vld [vmem:[#allocation10 + $0x150] sm:$0xff]  }
 0x185   :  { %3430 = vmatpush3.bf16.msra.mxu1 %v3960_v31  ;;  %2372 = vmatprep.subr.bf16.mxu0 %v3947_v35  ;;  %v416_v31 = vsub.s32 2, %v4378_v29  ;;  %v3988_v35 = vld [vmem:[#allocation10 + $0x110] sm:$0xff]  }
 0x186   :  { %3437 = vmatprep.subr.bf16.mxu1 %v3961_v36 }
 0x188   :  { %2373 = vmatpush2.bf16.msra.mxu0 %v3945_v41  ;;  %v3989_v41 = vld [vmem:[#allocation10 + $0x148] sm:$0xff]  }
 0x189   :  { %2374 = vmatprep.subr.bf16.mxu0 %v3952_v6  ;;  %v417_v6 = vrot.slane %v4381_v40, %v416_v31 }
 0x18c   :  { %2375 = vmatpush2.bf16.msra.mxu0 %v3950_v44  ;;  %v421_v44 = vrot.slane %v4381_v40, %v420_v39 }
 0x18d   :  { %3459 = vmatprep.subr.bf16.mxu0 %v3977_v3 }
 0x18f   :  { %v2050_v50 = vpop.f32.mrf.mxu0  ;;  %2377 = vmatmul.mubr.bf16.vlgmr.msra.gmra.mxu0 %v4348_v15 }
 0x190   :  { %v2051_v52 = vadd.f32 %v2050_v50, %v2010_v49  ;;  %3460 = vmatpush3.bf16.msra.mxu0 %v3978_v13 }
 0x191   :  { %v2052_v17 = vpop.f32.mrf.mxu0  ;;  %3461 = vmatprep.subr.bf16.mxu0 %v3979_v4 }
 0x192   :  { %v2092_v55 = vadd.f32 %v4371_v48, %v2051_v52  ;;  %v2053_v56 = vadd.f32 %v2052_v17, %v2012_v33 }
 0x193   :  { %v2054_v58 = vpop.f32.mrf.mxu0 }
 0x194   :  { %v2432_v59 = vmul.f32 %v2426_v54, %v2092_v55  ;;  %2971 = vst [vmem:[#allocation14] sm:$0xff] %v2092_v55  ;;  %v2094_v32 = vadd.f32 %v4373_v53, %v2053_v56  ;;  %3462 = vmatpush3.bf16.msra.mxu0 %v3980_v8  ;;  %v2428_v58 = vld [vmem:[#allocation8 + $0x10] sm:$0xff] }
 0x195   :  { %v2055_v37 = vpop.f32.mrf.mxu0  ;;  %3463 = vmatprep.subr.bf16.mxu0 %v3981_v10 }
 0x196   :  { %v2438_v51 = vmax.f32 %v2432_v59, 0.0  ;;  %2977 = vst [vmem:[#allocation16] sm:$0xff] %v2432_v59  ;;  %v2433_v34 = vmul.f32 %v2427_v57, %v2094_v32  ;;  %2972 = vst [vmem:[#allocation14 + $0x8] sm:$0xff] %v2094_v32 }
 0x198   :  { %v4393_v15 = vpop.f32.mrf.mxu1  ;;  %2983 = vst [vmem:[#allocation17] sm:$0xff] %v2438_v51  ;;  %2978 = vst [vmem:[#allocation16 + $0x8] sm:$0xff] %v2433_v34  ;;  %v2439_v38 = vmax.f32 %v2433_v34, 0.0  ;;  %v2444_v62 = vpack.c.bf16 %v2438_v51, %v2438_v51  ;;  %3464 = vmatpush3.bf16.msra.mxu0 %v3982_v12  ;;  %v2429_v51 = vld [vmem:[#allocation8 + $0x18] sm:$0xff]  ;;  %v424_v12 = vsub.s32 4, %v4378_v29 }
 0x199   :  { %3465 = vmatprep.subr.bf16.mxu0 %v3983_v16  ;;  %v2133_v50 = vadd.f32 %v4393_v15, %v417_v6 }
 0x19a   :  { %v4395_v60 = vpop.f32.mrf.mxu1  ;;  %v2445_v48 = vpack.c.bf16 %v2439_v38, %v2439_v38  ;;  %2984 = vst [vmem:[#allocation17 + $0x8] sm:$0xff] %v2439_v38  ;;  %v425_v16 = vrot.slane %v4381_v40, %v424_v12 }
 0x19b   :  { %v2135_v52 = vadd.f32 %v4395_v60, %v421_v44 }
 0x19c   :  { %v2136_v63 = vpop.f32.mrf.mxu1  ;;  %2873 = vmatprep.mubr.bf16.mxu1 %v2445_v48  ;;  %3466 = vmatpush3.bf16.msra.mxu0 %v3984_v19 }
 0x19d   :  { %2874 = vmatmul.mubr.bf16.vlgmr.msra.gmra.mxu1 %v2444_v62  ;;  %3467 = vmatprep.subr.bf16.mxu0 %v3985_v21 }
 0x19e   :  { %v2137_v53 = vpop.f32.mrf.mxu1  ;;  %3438 = vmatpush3.bf16.msra.mxu1 %v3962_v61 }
 0x19f   :  { %3439 = vmatprep.subr.bf16.mxu1 %v3963_v0 }
 0x1a0   :  { %3468 = vmatpush3.bf16.msra.mxu0 %v3986_v23 }
 0x1a1   :  { %3469 = vmatprep.subr.bf16.mxu0 %v3987_v30  ;;  %v2431_v30 = vld [vmem:[#allocation8 + $0x28] sm:$0xff] }
 0x1a2   :  { %3440 = vmatpush3.bf16.msra.mxu1 %v3964_v1 }
 0x1a3   :  { %3441 = vmatprep.subr.bf16.mxu1 %v3965_v7 }
 0x1a4   :  { %3470 = vmatpush3.bf16.msra.mxu0 %v3988_v35 }
 0x1a5   :  { %3471 = vmatprep.subr.bf16.mxu0 %v3989_v41 }
 0x1a6   :  { %3442 = vmatpush3.bf16.msra.mxu1 %v3966_v2 }
 0x1a7   :  { %3443 = vmatprep.subr.bf16.mxu1 %v3967_v5 }
 0x1a8   :  { %3472 = vmatpush3.bf16.msra.mxu0 %v3990_v42 }
 0x1a9   :  { %3473 = vmatprep.subr.bf16.mxu0 %v3991_v45 }
 0x1aa   :  { %3444 = vmatpush3.bf16.msra.mxu1 %v3968_v9 }
 0x1ab   :  { %3445 = vmatprep.subr.bf16.mxu1 %v3969_v11 }
 0x1ac   :  { %3474 = vmatpush3.bf16.msra.mxu0 %v3992_v46 }
 0x1ae   :  { %3446 = vmatpush3.bf16.msra.mxu1 %v3970_v14  ;;  %v428_v14 = vsub.s32 5, %v4378_v29 }
 0x1af   :  { %3447 = vmatprep.subr.bf16.mxu1 %v3971_v18 }
 0x1b0   :  { %v429_v18 = vrot.slane %v4381_v40, %v428_v14 }
 0x1b2   :  { %3448 = vmatpush3.bf16.msra.mxu1 %v3972_v20 }
 0x1b3   :  { %3449 = vmatprep.subr.bf16.mxu1 %v3973_v22 }
 0x1b6   :  { %3450 = vmatpush3.bf16.msra.mxu1 %v3974_v24 }
 0x1b7   :  { %3451 = vmatprep.subr.bf16.mxu1 %v3975_v25  ;;  %v2430_v25 = vld [vmem:[#allocation8 + $0x20] sm:$0xff] }
 0x1ba   :  { %3452 = vmatpush3.bf16.msra.mxu1 %v3976_v26 }
 0x1cf   :  { %v2173_v27 = vpop.f32.mrf.mxu0 }
 0x1d0   :  { %v2174_v54 = vadd.f32 %v2173_v27, %v2133_v50 }
 0x1d1   :  { %v2175_v28 = vpop.f32.mrf.mxu0 }
 0x1d2   :  { %v2176_v55 = vadd.f32 %v2175_v28, %v2135_v52 }
 0x1d3   :  { %v2177_v36 = vpop.f32.mrf.mxu0 }
 0x1d5   :  { %v2178_v47 = vpop.f32.mrf.mxu0 }
 0x1d8   :  { %v2214_v43 = vpop.f32.mrf.mxu1 }
 0x1d9   :  { %v2215_v56 = vadd.f32 %v2214_v43, %v2174_v54 }
 0x1da   :  { %v2216_v49 = vpop.f32.mrf.mxu1 }
 0x1db   :  { %v2217_v59 = vadd.f32 %v2216_v49, %v2176_v55  ;;  %v3366_v49 = vld [vmem:[#allocation11] ss:$0 sm:$0xff] }
 0x1dc   :  { %v2218_v33 = vpop.f32.mrf.mxu1 }
 0x1de   :  { %v2219_v17 = vpop.f32.mrf.mxu1 }
 0x1e0   :  { %v2255_v57 = vpop.f32.mrf.mxu1 }
 0x1e1   :  { %v2256_v32 = vadd.f32 %v2255_v57, %v2215_v56 }
 0x1e2   :  { %v2257_v37 = vpop.f32.mrf.mxu1 }
 0x1e3   :  { %v2434_v34 = vmul.f32 %v2428_v58, %v2256_v32  ;;  %2973 = vst [vmem:[#allocation14 + $0x10] sm:$0xff] %v2256_v32  ;;  %v2258_v38 = vadd.f32 %v2257_v37, %v2217_v59 }
 0x1e4   :  { %v2259_v48 = vpop.f32.mrf.mxu1 }
 0x1e5   :  { %v2440_v15 = vmax.f32 %v2434_v34, 0.0  ;;  %2979 = vst [vmem:[#allocation16 + $0x10] sm:$0xff] %v2434_v34  ;;  %v2435_v61 = vmul.f32 %v2429_v51, %v2258_v38  ;;  %2974 = vst [vmem:[#allocation14 + $0x18] sm:$0xff] %v2258_v38 }
 0x1e6   :  { %v2260_v60 = vpop.f32.mrf.mxu1 }
 0x1e7   :  { %2985 = vst [vmem:[#allocation17 + $0x10] sm:$0xff] %v2440_v15  ;;  %v2441_v62 = vmax.f32 %v2435_v61, 0.0  ;;  %2980 = vst [vmem:[#allocation16 + $0x18] sm:$0xff] %v2435_v61  ;;  %v2446_v0 = vpack.c.bf16 %v2440_v15, %v2440_v15 }
 0x1e9   :  { %2986 = vst [vmem:[#allocation17 + $0x18] sm:$0xff] %v2441_v62  ;;  %v2447_v63 = vpack.c.bf16 %v2441_v62, %v2441_v62 }
 0x1eb   :  { %2913 = vmatprep.mubr.bf16.mxu1 %v2447_v63 }
 0x1ec   :  { %2914 = vmatmul.mubr.bf16.vlgmr.msra.gmra.mxu1 %v2446_v0 }
 0x20f   :  { %v2296_v53 = vpop.f32.mrf.mxu0 }
 0x210   :  { %v2297_v19 = vadd.f32 %v2296_v53, %v425_v16 }
 0x211   :  { %v2298_v1 = vpop.f32.mrf.mxu0 }
 0x212   :  { %v2299_v20 = vadd.f32 %v2298_v1, %v429_v18 }
 0x213   :  { %v2300_v7 = vpop.f32.mrf.mxu0 }
 0x215   :  { %v2301_v2 = vpop.f32.mrf.mxu0 }
 0x220   :  { %v2337_v3 = vpop.f32.mrf.mxu1 }
 0x221   :  { %v2338_v21 = vadd.f32 %v2337_v3, %v2297_v19 }
 0x222   :  { %v2339_v13 = vpop.f32.mrf.mxu1 }
 0x223   :  { %v2340_v23 = vadd.f32 %v2339_v13, %v2299_v20 }
 0x224   :  { %v2341_v4 = vpop.f32.mrf.mxu1 }
 0x226   :  { %v2342_v5 = vpop.f32.mrf.mxu1 }
 0x228   :  { %v2419_v8 = vpop.f32.mrf.mxu1 }
 0x22a   :  { %v2421_v9 = vpop.f32.mrf.mxu1 }
 0x22c   :  { %v2423_v10 = vpop.f32.mrf.mxu1 }
 0x22e   :  { %v2424_v11 = vpop.f32.mrf.mxu1 }
 0x24f   :  { %v2378_v22 = vpop.f32.mrf.mxu0 }
 0x250   :  { %v2379_v24 = vadd.f32 %v2378_v22, %v2338_v21 }
 0x251   :  { %v2380_v26 = vpop.f32.mrf.mxu0 }
 0x252   :  { %v2420_v27 = vadd.f32 %v2419_v8, %v2379_v24  ;;  %v2381_v28 = vadd.f32 %v2380_v26, %v2340_v23 }
 0x253   :  { %v2382_v31 = vpop.f32.mrf.mxu0 }
 0x254   :  { %v2436_v35 = vmul.f32 %v2430_v25, %v2420_v27  ;;  %2975 = vst [vmem:[#allocation14 + $0x20] sm:$0xff] %v2420_v27  ;;  %v2422_v36 = vadd.f32 %v2421_v9, %v2381_v28 }
 0x255   :  { %v2383_v29 = vpop.f32.mrf.mxu0 }
 0x256   :  { %v2442_v39 = vmax.f32 %v2436_v35, 0.0  ;;  %2981 = vst [vmem:[#allocation16 + $0x20] sm:$0xff] %v2436_v35  ;;  %v2437_v47 = vmul.f32 %v2431_v30, %v2422_v36  ;;  %2976 = vst [vmem:[#allocation14 + $0x28] sm:$0xff] %v2422_v36 }
 0x258   :  { %2987 = vst [vmem:[#allocation17 + $0x20] sm:$0xff] %v2442_v39  ;;  %2982 = vst [vmem:[#allocation16 + $0x28] sm:$0xff] %v2437_v47  ;;  %v2443_v40 = vmax.f32 %v2437_v47, 0.0  ;;  %v2448_v6 = vpack.c.bf16 %v2442_v39, %v2442_v39 }
 0x25a   :  { %v2449_v41 = vpack.c.bf16 %v2443_v40, %v2443_v40  ;;  %2988 = vst [vmem:[#allocation17 + $0x28] sm:$0xff] %v2443_v40 }
 0x25c   :  { %2953 = vmatprep.mubr.bf16.mxu0 %v2449_v41 }
 0x25d   :  { %v3431_v42 = vpop.f32.mrf.mxu1  ;;  %2954 = vmatmul.mubr.bf16.vlgmr.msra.gmra.mxu0 %v2448_v6 }
 0x25f   :  { %v3432_v43 = vpop.f32.mrf.mxu1 }
 0x260   :  { %v3433_v44 = vadd.f32 %v3432_v43, %v3431_v42 }
 0x261   :  { %v3434_v45 = vpop.f32.mrf.mxu1 }
 0x262   :  { %v2876_v52 = vadd.f32 %v3433_v44, %v3366_v49 }
 0x263   :  { %v3435_v46 = vpop.f32.mrf.mxu1 }
 0x2ac   :  { %v3453_v50 = vpop.f32.mrf.mxu1 }
 0x2ae   :  { %v3454_v33 = vpop.f32.mrf.mxu1 }
 0x2af   :  { %v3455_v54 = vadd.f32 %v3454_v33, %v3453_v50 }
 0x2b0   :  { %v3456_v17 = vpop.f32.mrf.mxu1 }
 0x2b1   :  { %v2916_v55 = vadd.f32 %v3455_v54, %v2876_v52 }
 0x2b2   :  { %v3457_v56 = vpop.f32.mrf.mxu1 }
 0x31d   :  { %v3475_v57 = vpop.f32.mrf.mxu0 }
 0x31f   :  { %v3476_v58 = vpop.f32.mrf.mxu0 }
 0x320   :  { %v3477_v59 = vadd.f32 %v3476_v58, %v3475_v57 }
 0x321   :  { %v3478_v32 = vpop.f32.mrf.mxu0 }
 0x322   :  { %v2956_v37 = vadd.f32 %v3477_v59, %v2916_v55 }
 0x323   :  { %v3479_v51 = vpop.f32.mrf.mxu0 }
 0x324   :  { %2989 = vst [vmem:[#allocation19] sm:$0xff] %v2956_v37  ;;  %2961 = vmax.xlane.f32.xlu0 %v2956_v37 }
 0x3ad   :  { %v2962_v34 = vpop.xlane.xlu0 %2961 }
 0x3ae   :  { %v2963_v38 = vsub.f32 %v2956_v37, %v2962_v34 }
 0x3b0   :  { %v2964_v48 = vmul.f32 1.442695, %v2963_v38 }
 0x3b2   :  { %3993 = vpow2.f32 %v2964_v48 }
 0x3bf   :  { %v3994_v15 = vpop.eup %3993 }
 0x3c0   :  { %2966 = vadd.xlane.f32.xlu0 %v3994_v15 }
 0x3c1   :  { %4129 = shalt.err (!%p4126_p6)
}
 0x3c2   :  { %3009 = dma.vmem_to_hbm [thread:$0]  %s3007_s5, 768, %s4429_s7, [#allocation15]  }
 0x3c3   :  { %s4138_s28 = scalar_lea.vmem %s3027_s25, 768  ;;  %p4143_p8 = scmp.lt.s32.totalorder %s3027_s25, %s3027_s25 }
 0x3c4   :  { %p4139_p7 = scmp.ne.s32.totalorder %s3027_s25, %s4138_s28  ;;  %p4144_p9 = scmp.lt.s32.totalorder %s4138_s28, %s4138_s28 }
 0x3c6   :  { %p4145_p10 = por %p4144_p9, %p4143_p8 }
 0x3c8   :  { %p4146_p11 = pnand %p4145_p10, %p4139_p7 }
 0x3ca   :  { %4149 = shalt.err (!%p4146_p11)
}
 0x3cb   :  { %3029 = dma.vmem_to_hbm [thread:$0]  %s3027_s25, 768, %s4431_s9, [#allocation18]  }
 0x3cc   :  { %s4245_s11 = smov [#allocation16]  }
 0x3cd   :  { %s3016_s12 = sshll.u32 %s4245_s11, 4  ;;  %s3017_s12 = int_to_ptr.vmem [resolvable:$true] %s3016_s12 }
 0x3ce   :  { %s4158_s13 = scalar_lea.vmem %s3017_s12, 768  ;;  %p4163_p13 = scmp.lt.s32.totalorder %s3017_s12, %s3017_s12 }
 0x3cf   :  { %p4159_p12 = scmp.ne.s32.totalorder %s3017_s12, %s4158_s13  ;;  %p4164_p0 = scmp.lt.s32.totalorder %s4158_s13, %s4158_s13 }
 0x3d1   :  { %p4165_p1 = por %p4164_p0, %p4163_p13 }
 0x3d3   :  { %p4166_p2 = pnand %p4165_p1, %p4159_p12 }
 0x3d5   :  { %4169 = shalt.err (!%p4166_p2)
}
 0x3d6   :  { %3019 = dma.vmem_to_hbm [thread:$0]  %s3017_s12, 768, %s4430_s8, [#allocation15]  }
 0x3d7   :  { %s4246_s14 = smov [#allocation19]  }
 0x3d8   :  { %s3036_s15 = sshll.u32 %s4246_s14, 4  ;;  %s3037_s15 = int_to_ptr.vmem [resolvable:$true] %s3036_s15 }
 0x3d9   :  { %s4178_s0 = scalar_lea.vmem %s3037_s15, 128  ;;  %p4183_p4 = scmp.lt.s32.totalorder %s3037_s15, %s3037_s15 }
 0x3da   :  { %p4179_p3 = scmp.ne.s32.totalorder %s3037_s15, %s4178_s0  ;;  %p4184_p5 = scmp.lt.s32.totalorder %s4178_s0, %s4178_s0 }
 0x3dc   :  { %p4185_p6 = por %p4184_p5, %p4183_p4 }
 0x3de   :  { %p4186_p7 = pnand %p4185_p6, %p4179_p3 }
 0x3e0   :  { %4189 = shalt.err (!%p4186_p7)
}
 0x3e1   :  { %3039 = dma.vmem_to_hbm [thread:$0]  %s3037_s15, 128, %s4432_s10, [#allocation18]  }
 0x3e2   :  { %s4247_s17 = smov [#allocation13]  }
 0x3e3   :  { %s2996_s18 = sshll.u32 %s4247_s17, 4  ;;  %s2997_s18 = int_to_ptr.vmem [resolvable:$true] %s2996_s18 }
 0x3e4   :  { %s4198_s8 = scalar_lea.vmem %s2997_s18, 128  ;;  %p4203_p9 = scmp.lt.s32.totalorder %s2997_s18, %s2997_s18 }
 0x3e5   :  { %p4199_p8 = scmp.ne.s32.totalorder %s2997_s18, %s4198_s8  ;;  %p4204_p10 = scmp.lt.s32.totalorder %s4198_s8, %s4198_s8 }
 0x3e7   :  { %p4205_p11 = por %p4204_p10, %p4203_p9 }
 0x3e9   :  { %p4206_p12 = pnand %p4205_p11, %p4199_p8 }
 0x449   :  { %v2967_v61 = vpop.xlane.xlu0 %2966 }
 0x44a   :  { %3995 = vrcp.f32 %v2967_v61 }
 0x457   :  { %v3996_v60 = vpop.eup %3995 }
 0x458   :  { %v2969_v62 = vmul.f32 %v3996_v60, %v3994_v15 }
 0x45a   :  { %2970 = vst [vmem:[#allocation13] sm:$0xff] %v2969_v62 }
 0x45b   :  { %4209 = shalt.err (!%p4206_p12)
}
 0x45c   :  { %2999 = dma.vmem_to_hbm [thread:$0]  %s2997_s18, 128, %s4428_s6, [#allocation4]  }
 0x45d   :  { %4226 = dma.done.wait [#allocation4], 128  }
 0x45e   :  { %4227 = vsyncadd [#allocation4], 4294967168 }
 0x45f   :  { %4228 = dma.done.wait [#allocation15], 1536  }
 0x460   :  { %4229 = vsyncadd [#allocation15], 4294965760 }
 0x461   :  { %4230 = dma.done.wait [#allocation18], 896  }
 0x462   :  { %4231 = vsyncadd [#allocation18], 4294966400 }
 0x463   :  { %3055 = vsyncpa [#allocation3], 1 }
 0x464   :  { %3056 = vsyncpa [#allocation6], 1 }
 0x465   :  { %3057 = vsyncpa [#allocation9], 1 }
 0x466   :  { %3058 = vsyncpa [#allocation12], 1 }
 0x467   :  { %3059 = vsyncpa [#allocation4], 1 }
 0x468   :  { %3060 = vsyncpa [#allocation15], 1 }
 0x469   :  { %3061 = vsyncpa [#allocation18], 1 }

</bundles_post_ra>
